<compile_context>
chip_gen: v6e
topology: v6e:2x2x1
jax: 0.10.0
libtpu: 0.0.40
codegen_flags: <defaults>
</compile_context>

<pallas_src>
import jax
import jax.numpy as jnp
import numpy as np
from jax.experimental import pallas as pl
from jax.experimental.pallas import tpu as pltpu

NEG_SLOPE = 0.01   # nn.LeakyReLU default
EPS = 1e-5         # nn.BatchNorm1d default


def _cdiv(a, b):
    return -(-a // b)


def _round_up(x, m):
    return _cdiv(x, m) * m


# ----------------------------------------------------------------------------- kernel

def dense_model_kernel(x_ref, wpre_ref, bupa_ref, wa_ref, bb_ref, sc_ref, sh_ref,
                       wdna_ref, bdn_ref, out_ref):
    f32 = jnp.float32
    cd = wpre_ref.dtype                 # MXU operand dtype (f32 or bf16); accumulation is f32
    D = wa_ref.shape[-1]
    nblk = wa_ref.shape[0]

    x_in = x_ref[...]                   # (IN, TB) — feature-major, batch on the 128-lane axis

    # Hoisted wide matmul: xa0, all six folded "xb" contributions and the xb share of the
    # down projection, in one MXU call (M = 7D+1, N = TB lane-dense).
    xpre = jnp.dot(wpre_ref[...], x_in, preferred_element_type=f32)   # (7D+1, TB)

    xa = xpre[:D, :] + bupa_ref[...]    # (D, TB) f32 — the only loop-carried state
    for i in range(nblk):               # 6 DenseBlocks, statically unrolled
        h = (jnp.dot(wa_ref[i], xa.astype(cd), preferred_element_type=f32)
             + xpre[D * (i + 1):D * (i + 2), :] + bb_ref[i])          # (D, TB)
        h = jnp.maximum(h, NEG_SLOPE * h)                             # LeakyReLU (Dropout eval = id)
        xa = xa + (h * sc_ref[i] + sh_ref[i])                         # folded BatchNorm + residual

    # output_down_proj (xa share) + pre-folded xb share + bias.
    scores = (jnp.sum(xa * wdna_ref[...], axis=0, keepdims=True)
              + xpre[nblk * D + D:, :] + bdn_ref[...])                # (1, TB) lane-dense
    out_ref[...] = jax.nn.sigmoid(scores).astype(out_ref.dtype)


# ----------------------------------------------------------------------------- host fusion

def fuse_params(raw, matmul_dtype=jnp.float32):
    """Host-side algebraic fusion of the model parameters.

    * Linear1∘Linear2 of each DenseBlock -> single matmul (W = W1 @ W2).
    * x[:, D:] is affine in the raw inputs, so all of its matmul contributions (6 blocks +
      down projection) fold onto the inputs as one wide pre-matmul W_pre (IN, 7D+1).
    * Eval-mode BatchNorm1d -> per-feature scale/shift.
    * output_down_proj's two Linears -> single vector + scalar bias.
    All weights are stored transposed (feature-major) for the lane-dense kernel layout.
    MXU operands are cast to `matmul_dtype` (bf16 recommended on v5e/v6e/v7x); biases,
    scale/shift and the elementwise epilogue stay f32.
    """
    w_up, b_up, blocks, w_d1, b_d1, w_d2, b_d2 = raw
    D = blocks[0][2].shape[1]
    md = matmul_dtype

    wup_a, wup_b = w_up[:, :D], w_up[:, D:]          # (IN, D), (IN, IN)
    bup_a, bup_b = b_up[:D], b_up[D:]

    wa_t, bb, sc, sh = [], [], [], []
    wpre_cols = [wup_a]                              # column 0..D-1: xa0
    for i, (w1, b1, w2, b2, gamma, beta, mean, var) in enumerate(blocks):
        W = w1 @ w2                                  # (3D+1, D)  fused Linear1@Linear2
        b = b1 @ w2 + b2                             # (D,)
        Wa, Wb = W[:D], W[D:]                        # xa / xb contributions
        # xb before block i == inputs @ wup_b + bup_b + i*inputs  =>  fold onto inputs:
        wpre_cols.append(wup_b @ Wb + float(i) * Wb)         # (IN, D)
        bb.append((b + bup_b @ Wb)[:, None])                 # (D, 1)
        s = gamma / jnp.sqrt(var + EPS)
        sc.append(s[:, None])
        sh.append((beta - mean * s)[:, None])
        wa_t.append(Wa.T)                            # transposed for feature-major matmul

    nblk = len(blocks)
    wdn = (w_d1 @ w_d2)[:, 0]                        # (3D+1,)  fused down projection
    bdn = (b_d1 @ w_d2 + b_d2)[0]
    wdn_a, wdn_b = wdn[:D], wdn[D:]
    # final xb == inputs @ wup_b + bup_b + nblk*inputs  =>  fold its down-proj share too.
    wpre_cols.append((wup_b @ wdn_b + float(nblk) * wdn_b)[:, None])  # (IN, 1)
    bdn_full = bdn + bup_b @ wdn_b

    w_pre_t = jnp.concatenate(wpre_cols, axis=1).T   # (7D+1, IN)

    return (w_pre_t.astype(md),
            bup_a[:, None],                          # (D, 1) f32
            jnp.stack(wa_t).astype(md),              # (6, D, D)
            jnp.stack(bb), jnp.stack(sc), jnp.stack(sh),   # (6, D, 1) f32 each
            wdn_a[:, None],                          # (D, 1) f32
            jnp.reshape(bdn_full, (1, 1)))           # (1, 1) f32


# ----------------------------------------------------------------------------- wrapper

def _auto_tile_b(B, cap=2048):
    # 128-aligned (lane-dense output blocks). cap=2048 keeps live state to a few hundred
    # KiB — far inside v5e/v6e's 128 MiB and v7x's 64 MiB VMEM — while amortizing the
    # ~0.35us/step pipeline overhead; single-TC v5e/v6e can raise it, v7x may prefer 1024
    # so >= 2 grid steps exist for its two TensorCores.
    return min(cap, _round_up(max(B, 1), 128))


def dense_model_forward(inputs, fused_params, *, tile_b=None, input_dtype=None):
    """Fused DenseModel forward (inference): inputs (B, 2D+1) f32 -> logits (B, 1) f32."""
    (w_pre_t, bup_a, wa_blk, bb_blk, sc_blk, sh_blk, wdn_a, bdn) = fused_params
    B, in_f = inputs.shape

    if input_dtype is None:
        # Match the MXU operand dtype: in bf16 mode the (B, IN) input stream (the dominant
        # HBM traffic) is halved; the residual/epilogue math stays f32 either way.
        input_dtype = w_pre_t.dtype
    if tile_b is None:
        tile_b = _auto_tile_b(B)
    assert tile_b % 128 == 0, "tile_b must be a multiple of 128 (lane-dense output blocks)"

    Bp = _round_up(B, tile_b)
    # Feature-major (transposed) input: batch on lanes. Padded lanes produce garbage logits
    # that are sliced off; they never mix with real lanes (every op is lane-independent).
    xT = inputs.T.astype(input_dtype)
    if Bp != B:
        xT = jnp.pad(xT, ((0, 0), (0, Bp - B)))
    grid = (Bp // tile_b,)

    weights = (w_pre_t, bup_a, wa_blk, bb_blk, sc_blk, sh_blk, wdn_a, bdn)

    def full_spec(arr):
        idx = (0,) * arr.ndim
        return pl.BlockSpec(arr.shape, lambda i, _idx=idx: _idx)

    out = pl.pallas_call(
        dense_model_kernel,
        out_shape=jax.ShapeDtypeStruct((1, Bp), jnp.float32),
        grid_spec=pltpu.PrefetchScalarGridSpec(
            num_scalar_prefetch=0,
            grid=grid,
            in_specs=[pl.BlockSpec((in_f, tile_b), lambda i: (0, i))]
                     + [full_spec(w) for w in weights],
            out_specs=pl.BlockSpec((1, tile_b), lambda i: (0, i)),
        ),
        # TODO(synk): on v7x, verify the batch grid is really sharded across both
        # TensorCores; if not, switch this axis to pltpu.CORE_PARALLEL / core_map.
        compiler_params=pltpu.CompilerParams(
            dimension_semantics=("parallel",)),
    )(xT, *weights)
    return out.reshape(Bp, 1)[:B]


# ----------------------------------------------------------------------------- references

def reference_pytorch(inputs, raw):
    """Faithful (unfused) eval-mode DenseModel forward in f32, mirroring the nn.Module."""
    w_up, b_up, blocks, w_d1, b_d1, w_d2, b_d2 = raw
    x = inputs @ w_up + b_up
    for (w1, b1, w2, b2, gamma, beta, mean, var) in blocks:
        h = (x @ w1 + b1) @ w2 + b2
        h = jnp.where(h > 0, h, NEG_SLOPE * h)                      # LeakyReLU; Dropout eval = id
        xn = (h - mean) / jnp.sqrt(var + EPS) * gamma + beta        # BatchNorm1d (running stats)
        x = x + jnp.concatenate([xn, inputs], axis=1)
    scores = (x @ w_d1 + b_d1) @ w_d2 + b_d2
    return jax.nn.sigmoid(scores)


def reference_fused(inputs, fused):
    """Structurally identical to the kernel math (folded/transposed weights), plain JAX."""
    (w_pre_t, bup_a, wa_blk, bb_blk, sc_blk, sh_blk, wdn_a, bdn) = fused
    cd = w_pre_t.dtype
    f32 = jnp.float32
    D = wa_blk.shape[-1]
    nblk = wa_blk.shape[0]
    x_t = inputs.T.astype(cd)
    xpre = jnp.dot(w_pre_t, x_t, preferred_element_type=f32)
    xa = xpre[:D, :] + bup_a
    for i in range(nblk):
        h = (jnp.dot(wa_blk[i], xa.astype(cd), preferred_element_type=f32)
             + xpre[D * (i + 1):D * (i + 2), :] + bb_blk[i])
        h = jnp.maximum(h, NEG_SLOPE * h)
        xa = xa + (h * sc_blk[i] + sh_blk[i])
    scores = (jnp.sum(xa * wdn_a, axis=0, keepdims=True)
              + xpre[nblk * D + D:, :] + bdn)
    return jax.nn.sigmoid(scores).T


# ----------------------------------------------------------------------------- test

if __name__ == "__main__":
    INPUT_DIMS = 65            # model width; must be odd so int(1.5*d) == 3*(d//2)+1
    B = 128                    # batch
    D = INPUT_DIMS // 2        # 32  (DenseBlock width)
    IN = INPUT_DIMS            # 65  = 2D+1
    UP = 3 * D + 1             # 97  = int(1.5 * 65)
    HID = 2 * D                # 64
    NBLK = 6

    keys = iter(jax.random.split(jax.random.PRNGKey(0), 80))

    def rnd(shape, scale=0.05):
        return scale * jax.random.normal(next(keys), shape, jnp.float32)

    # Parameters in "math" layout (in_features, out_features) — the transpose of
    # PyTorch nn.Linear's (out, in) weight storage.
    w_up, b_up = rnd((IN, UP)), rnd((UP,))
    blocks = []
    for _ in range(NBLK):
        w1, b1 = rnd((UP, HID)), rnd((HID,))
        w2, b2 = rnd((HID, D)), rnd((D,))
        gamma = 1.0 + rnd((D,), 0.1)
        beta = rnd((D,), 0.1)
        mean = rnd((D,), 0.1)
        var = jax.nn.softplus(jax.random.normal(next(keys), (D,), jnp.float32)) + 0.5
        blocks.append((w1, b1, w2, b2, gamma, beta, mean, var))
    w_d1, b_d1 = rnd((UP, IN)), rnd((IN,))
    w_d2, b_d2 = rnd((IN, 1)), rnd((1,))
    raw = (w_up, b_up, blocks, w_d1, b_d1, w_d2, b_d2)

    inputs = jax.random.normal(next(keys), (B, IN), jnp.float32)
    ref = reference_pytorch(inputs, raw)

    # --- f32 MXU operands ---------------------------------------------------------
    fused_f32 = fuse_params(raw, jnp.float32)
    out_f32 = dense_model_forward(inputs, fused_f32)
    jax.block_until_ready(out_f32)
    assert out_f32.shape == (B, 1)
    np.testing.assert_allclose(np.asarray(out_f32), np.asarray(ref),
                               rtol=5e-3, atol=5e-3)   # vs faithful unfused reference
    np.testing.assert_allclose(np.asarray(out_f32),
                               np.asarray(reference_fused(inputs, fused_f32)),
                               rtol=5e-4, atol=5e-4)   # vs structurally identical reference

    # --- non-multiple-of-tile batch exercises the padding / slicing path -----------
    out_pad = dense_model_forward(inputs[:37], fused_f32)
    jax.block_until_ready(out_pad)
    assert out_pad.shape == (37, 1)
    np.testing.assert_allclose(np.asarray(out_pad), np.asarray(ref[:37]),
                               rtol=5e-3, atol=5e-3)

    # --- bf16 MXU operands + bf16 input stream (v5e/v6e/v7x), f32 accumulation ------
    fused_bf16 = fuse_params(raw, jnp.bfloat16)
    out_bf16 = dense_model_forward(inputs, fused_bf16)
    jax.block_until_ready(out_bf16)
    np.testing.assert_allclose(np.asarray(out_bf16), np.asarray(ref),
                               rtol=2e-2, atol=2e-2)

    print("KERNEL_OK")
</pallas_src>

<mosaic_0001>
module attributes {stable_mosaic.version = 11 : i64} {
  func.func @dense_model_kernel(%arg0: i32, %arg1: memref<65x128xf32, #tpu.memory_space<vmem>>, %arg2: memref<225x65xf32, #tpu.memory_space<vmem>>, %arg3: memref<32x1xf32, #tpu.memory_space<vmem>>, %arg4: memref<6x32x32xf32, #tpu.memory_space<vmem>>, %arg5: memref<6x32x1xf32, #tpu.memory_space<vmem>>, %arg6: memref<6x32x1xf32, #tpu.memory_space<vmem>>, %arg7: memref<6x32x1xf32, #tpu.memory_space<vmem>>, %arg8: memref<32x1xf32, #tpu.memory_space<vmem>>, %arg9: memref<1x1xf32, #tpu.memory_space<vmem>>, %arg10: memref<1x128xf32, #tpu.memory_space<vmem>>) attributes {dimension_semantics = [#tpu.dimension_semantics<parallel>], iteration_bounds = array<i64: 1>, scalar_prefetch = 0 : i64, scratch_operands = 0 : i64, tpu.core_type = #tpu.core_type<tc>, window_params = [{transform_indices = @transform_0, window_bounds = array<i64: 65, 128>}, {pipeline_mode = #tpu.pipeline_mode<synchronous>, transform_indices = @transform_1, window_bounds = array<i64: 225, 65>}, {pipeline_mode = #tpu.pipeline_mode<synchronous>, transform_indices = @transform_2, window_bounds = array<i64: 32, 1>}, {pipeline_mode = #tpu.pipeline_mode<synchronous>, transform_indices = @transform_3, window_bounds = array<i64: 6, 32, 32>}, {pipeline_mode = #tpu.pipeline_mode<synchronous>, transform_indices = @transform_4, window_bounds = array<i64: 6, 32, 1>}, {pipeline_mode = #tpu.pipeline_mode<synchronous>, transform_indices = @transform_5, window_bounds = array<i64: 6, 32, 1>}, {pipeline_mode = #tpu.pipeline_mode<synchronous>, transform_indices = @transform_6, window_bounds = array<i64: 6, 32, 1>}, {pipeline_mode = #tpu.pipeline_mode<synchronous>, transform_indices = @transform_7, window_bounds = array<i64: 32, 1>}, {pipeline_mode = #tpu.pipeline_mode<synchronous>, transform_indices = @transform_8, window_bounds = array<i64: 1, 1>}, {transform_indices = @transform_9, window_bounds = array<i64: 1, 128>}]} {
    %c0 = arith.constant 0 : index
    %c0_0 = arith.constant 0 : index
    %0 = vector.load %arg1[%c0, %c0_0] : memref<65x128xf32, #tpu.memory_space<vmem>>, vector<65x128xf32>
    %c0_1 = arith.constant 0 : index
    %c0_2 = arith.constant 0 : index
    %1 = vector.load %arg2[%c0_1, %c0_2] : memref<225x65xf32, #tpu.memory_space<vmem>>, vector<225x65xf32>
    %cst = arith.constant dense<0.000000e+00> : vector<225x128xf32>
    %2 = tpu.matmul %1, %0, %cst {dimension_numbers = #tpu.dot_dimension_numbers<[1], [0], [0], [1], [0, 0, 1, 1], [], []>} : vector<225x65xf32>, vector<65x128xf32>, vector<225x128xf32> -> vector<225x128xf32>
    %3 = vector.extract_strided_slice %2 {offsets = [0, 0], sizes = [32, 128], strides = [1, 1]} : vector<225x128xf32> to vector<32x128xf32>
    %c0_3 = arith.constant 0 : index
    %c0_4 = arith.constant 0 : index
    %4 = vector.load %arg3[%c0_3, %c0_4] : memref<32x1xf32, #tpu.memory_space<vmem>>, vector<32x1xf32>
    %5 = vector.broadcast %4 : vector<32x1xf32> to vector<32x128xf32>
    %6 = arith.addf %3, %5 : vector<32x128xf32>
    %c0_5 = arith.constant 0 : index
    %c0_6 = arith.constant 0 : index
    %c0_7 = arith.constant 0 : index
    %7 = vector.load %arg4[%c0_5, %c0_6, %c0_7] : memref<6x32x32xf32, #tpu.memory_space<vmem>>, vector<1x32x32xf32>
    %8 = vector.shape_cast %7 : vector<1x32x32xf32> to vector<32x32xf32>
    %cst_8 = arith.constant dense<0.000000e+00> : vector<32x128xf32>
    %9 = tpu.matmul %8, %6, %cst_8 {dimension_numbers = #tpu.dot_dimension_numbers<[1], [0], [0], [1], [0, 0, 1, 1], [], []>} : vector<32x32xf32>, vector<32x128xf32>, vector<32x128xf32> -> vector<32x128xf32>
    %10 = vector.extract_strided_slice %2 {offsets = [32, 0], sizes = [32, 128], strides = [1, 1]} : vector<225x128xf32> to vector<32x128xf32>
    %11 = arith.addf %9, %10 : vector<32x128xf32>
    %c0_9 = arith.constant 0 : index
    %c0_10 = arith.constant 0 : index
    %c0_11 = arith.constant 0 : index
    %12 = vector.load %arg5[%c0_9, %c0_10, %c0_11] : memref<6x32x1xf32, #tpu.memory_space<vmem>>, vector<1x32x1xf32>
    %13 = vector.shape_cast %12 : vector<1x32x1xf32> to vector<32x1xf32>
    %14 = vector.broadcast %13 : vector<32x1xf32> to vector<32x128xf32>
    %15 = arith.addf %11, %14 : vector<32x128xf32>
    %cst_12 = arith.constant 0.00999999977 : f32
    %16 = vector.broadcast %cst_12 : f32 to vector<32x128xf32>
    %17 = arith.mulf %16, %15 : vector<32x128xf32>
    %18 = arith.maximumf %15, %17 : vector<32x128xf32>
    %c0_13 = arith.constant 0 : index
    %c0_14 = arith.constant 0 : index
    %c0_15 = arith.constant 0 : index
    %19 = vector.load %arg6[%c0_13, %c0_14, %c0_15] : memref<6x32x1xf32, #tpu.memory_space<vmem>>, vector<1x32x1xf32>
    %20 = vector.shape_cast %19 : vector<1x32x1xf32> to vector<32x1xf32>
    %21 = vector.broadcast %20 : vector<32x1xf32> to vector<32x128xf32>
    %22 = arith.mulf %18, %21 : vector<32x128xf32>
    %c0_16 = arith.constant 0 : index
    %c0_17 = arith.constant 0 : index
    %c0_18 = arith.constant 0 : index
    %23 = vector.load %arg7[%c0_16, %c0_17, %c0_18] : memref<6x32x1xf32, #tpu.memory_space<vmem>>, vector<1x32x1xf32>
    %24 = vector.shape_cast %23 : vector<1x32x1xf32> to vector<32x1xf32>
    %25 = vector.broadcast %24 : vector<32x1xf32> to vector<32x128xf32>
    %26 = arith.addf %22, %25 : vector<32x128xf32>
    %27 = arith.addf %6, %26 : vector<32x128xf32>
    %c1 = arith.constant 1 : index
    %c0_19 = arith.constant 0 : index
    %c0_20 = arith.constant 0 : index
    %28 = vector.load %arg4[%c1, %c0_19, %c0_20] : memref<6x32x32xf32, #tpu.memory_space<vmem>>, vector<1x32x32xf32>
    %29 = vector.shape_cast %28 : vector<1x32x32xf32> to vector<32x32xf32>
    %cst_21 = arith.constant dense<0.000000e+00> : vector<32x128xf32>
    %30 = tpu.matmul %29, %27, %cst_21 {dimension_numbers = #tpu.dot_dimension_numbers<[1], [0], [0], [1], [0, 0, 1, 1], [], []>} : vector<32x32xf32>, vector<32x128xf32>, vector<32x128xf32> -> vector<32x128xf32>
    %31 = vector.extract_strided_slice %2 {offsets = [64, 0], sizes = [32, 128], strides = [1, 1]} : vector<225x128xf32> to vector<32x128xf32>
    %32 = arith.addf %30, %31 : vector<32x128xf32>
    %c1_22 = arith.constant 1 : index
    %c0_23 = arith.constant 0 : index
    %c0_24 = arith.constant 0 : index
    %33 = vector.load %arg5[%c1_22, %c0_23, %c0_24] : memref<6x32x1xf32, #tpu.memory_space<vmem>>, vector<1x32x1xf32>
    %34 = vector.shape_cast %33 : vector<1x32x1xf32> to vector<32x1xf32>
    %35 = vector.broadcast %34 : vector<32x1xf32> to vector<32x128xf32>
    %36 = arith.addf %32, %35 : vector<32x128xf32>
    %cst_25 = arith.constant 0.00999999977 : f32
    %37 = vector.broadcast %cst_25 : f32 to vector<32x128xf32>
    %38 = arith.mulf %37, %36 : vector<32x128xf32>
    %39 = arith.maximumf %36, %38 : vector<32x128xf32>
    %c1_26 = arith.constant 1 : index
    %c0_27 = arith.constant 0 : index
    %c0_28 = arith.constant 0 : index
    %40 = vector.load %arg6[%c1_26, %c0_27, %c0_28] : memref<6x32x1xf32, #tpu.memory_space<vmem>>, vector<1x32x1xf32>
    %41 = vector.shape_cast %40 : vector<1x32x1xf32> to vector<32x1xf32>
    %42 = vector.broadcast %41 : vector<32x1xf32> to vector<32x128xf32>
    %43 = arith.mulf %39, %42 : vector<32x128xf32>
    %c1_29 = arith.constant 1 : index
    %c0_30 = arith.constant 0 : index
    %c0_31 = arith.constant 0 : index
    %44 = vector.load %arg7[%c1_29, %c0_30, %c0_31] : memref<6x32x1xf32, #tpu.memory_space<vmem>>, vector<1x32x1xf32>
    %45 = vector.shape_cast %44 : vector<1x32x1xf32> to vector<32x1xf32>
    %46 = vector.broadcast %45 : vector<32x1xf32> to vector<32x128xf32>
    %47 = arith.addf %43, %46 : vector<32x128xf32>
    %48 = arith.addf %27, %47 : vector<32x128xf32>
    %c2 = arith.constant 2 : index
    %c0_32 = arith.constant 0 : index
    %c0_33 = arith.constant 0 : index
    %49 = vector.load %arg4[%c2, %c0_32, %c0_33] : memref<6x32x32xf32, #tpu.memory_space<vmem>>, vector<1x32x32xf32>
    %50 = vector.shape_cast %49 : vector<1x32x32xf32> to vector<32x32xf32>
    %cst_34 = arith.constant dense<0.000000e+00> : vector<32x128xf32>
    %51 = tpu.matmul %50, %48, %cst_34 {dimension_numbers = #tpu.dot_dimension_numbers<[1], [0], [0], [1], [0, 0, 1, 1], [], []>} : vector<32x32xf32>, vector<32x128xf32>, vector<32x128xf32> -> vector<32x128xf32>
    %52 = vector.extract_strided_slice %2 {offsets = [96, 0], sizes = [32, 128], strides = [1, 1]} : vector<225x128xf32> to vector<32x128xf32>
    %53 = arith.addf %51, %52 : vector<32x128xf32>
    %c2_35 = arith.constant 2 : index
    %c0_36 = arith.constant 0 : index
    %c0_37 = arith.constant 0 : index
    %54 = vector.load %arg5[%c2_35, %c0_36, %c0_37] : memref<6x32x1xf32, #tpu.memory_space<vmem>>, vector<1x32x1xf32>
    %55 = vector.shape_cast %54 : vector<1x32x1xf32> to vector<32x1xf32>
    %56 = vector.broadcast %55 : vector<32x1xf32> to vector<32x128xf32>
    %57 = arith.addf %53, %56 : vector<32x128xf32>
    %cst_38 = arith.constant 0.00999999977 : f32
    %58 = vector.broadcast %cst_38 : f32 to vector<32x128xf32>
    %59 = arith.mulf %58, %57 : vector<32x128xf32>
    %60 = arith.maximumf %57, %59 : vector<32x128xf32>
    %c2_39 = arith.constant 2 : index
    %c0_40 = arith.constant 0 : index
    %c0_41 = arith.constant 0 : index
    %61 = vector.load %arg6[%c2_39, %c0_40, %c0_41] : memref<6x32x1xf32, #tpu.memory_space<vmem>>, vector<1x32x1xf32>
    %62 = vector.shape_cast %61 : vector<1x32x1xf32> to vector<32x1xf32>
    %63 = vector.broadcast %62 : vector<32x1xf32> to vector<32x128xf32>
    %64 = arith.mulf %60, %63 : vector<32x128xf32>
    %c2_42 = arith.constant 2 : index
    %c0_43 = arith.constant 0 : index
    %c0_44 = arith.constant 0 : index
    %65 = vector.load %arg7[%c2_42, %c0_43, %c0_44] : memref<6x32x1xf32, #tpu.memory_space<vmem>>, vector<1x32x1xf32>
    %66 = vector.shape_cast %65 : vector<1x32x1xf32> to vector<32x1xf32>
    %67 = vector.broadcast %66 : vector<32x1xf32> to vector<32x128xf32>
    %68 = arith.addf %64, %67 : vector<32x128xf32>
    %69 = arith.addf %48, %68 : vector<32x128xf32>
    %c3 = arith.constant 3 : index
    %c0_45 = arith.constant 0 : index
    %c0_46 = arith.constant 0 : index
    %70 = vector.load %arg4[%c3, %c0_45, %c0_46] : memref<6x32x32xf32, #tpu.memory_space<vmem>>, vector<1x32x32xf32>
    %71 = vector.shape_cast %70 : vector<1x32x32xf32> to vector<32x32xf32>
    %cst_47 = arith.constant dense<0.000000e+00> : vector<32x128xf32>
    %72 = tpu.matmul %71, %69, %cst_47 {dimension_numbers = #tpu.dot_dimension_numbers<[1], [0], [0], [1], [0, 0, 1, 1], [], []>} : vector<32x32xf32>, vector<32x128xf32>, vector<32x128xf32> -> vector<32x128xf32>
    %73 = vector.extract_strided_slice %2 {offsets = [128, 0], sizes = [32, 128], strides = [1, 1]} : vector<225x128xf32> to vector<32x128xf32>
    %74 = arith.addf %72, %73 : vector<32x128xf32>
    %c3_48 = arith.constant 3 : index
    %c0_49 = arith.constant 0 : index
    %c0_50 = arith.constant 0 : index
    %75 = vector.load %arg5[%c3_48, %c0_49, %c0_50] : memref<6x32x1xf32, #tpu.memory_space<vmem>>, vector<1x32x1xf32>
    %76 = vector.shape_cast %75 : vector<1x32x1xf32> to vector<32x1xf32>
    %77 = vector.broadcast %76 : vector<32x1xf32> to vector<32x128xf32>
    %78 = arith.addf %74, %77 : vector<32x128xf32>
    %cst_51 = arith.constant 0.00999999977 : f32
    %79 = vector.broadcast %cst_51 : f32 to vector<32x128xf32>
    %80 = arith.mulf %79, %78 : vector<32x128xf32>
    %81 = arith.maximumf %78, %80 : vector<32x128xf32>
    %c3_52 = arith.constant 3 : index
    %c0_53 = arith.constant 0 : index
    %c0_54 = arith.constant 0 : index
    %82 = vector.load %arg6[%c3_52, %c0_53, %c0_54] : memref<6x32x1xf32, #tpu.memory_space<vmem>>, vector<1x32x1xf32>
    %83 = vector.shape_cast %82 : vector<1x32x1xf32> to vector<32x1xf32>
    %84 = vector.broadcast %83 : vector<32x1xf32> to vector<32x128xf32>
    %85 = arith.mulf %81, %84 : vector<32x128xf32>
    %c3_55 = arith.constant 3 : index
    %c0_56 = arith.constant 0 : index
    %c0_57 = arith.constant 0 : index
    %86 = vector.load %arg7[%c3_55, %c0_56, %c0_57] : memref<6x32x1xf32, #tpu.memory_space<vmem>>, vector<1x32x1xf32>
    %87 = vector.shape_cast %86 : vector<1x32x1xf32> to vector<32x1xf32>
    %88 = vector.broadcast %87 : vector<32x1xf32> to vector<32x128xf32>
    %89 = arith.addf %85, %88 : vector<32x128xf32>
    %90 = arith.addf %69, %89 : vector<32x128xf32>
    %c4 = arith.constant 4 : index
    %c0_58 = arith.constant 0 : index
    %c0_59 = arith.constant 0 : index
    %91 = vector.load %arg4[%c4, %c0_58, %c0_59] : memref<6x32x32xf32, #tpu.memory_space<vmem>>, vector<1x32x32xf32>
    %92 = vector.shape_cast %91 : vector<1x32x32xf32> to vector<32x32xf32>
    %cst_60 = arith.constant dense<0.000000e+00> : vector<32x128xf32>
    %93 = tpu.matmul %92, %90, %cst_60 {dimension_numbers = #tpu.dot_dimension_numbers<[1], [0], [0], [1], [0, 0, 1, 1], [], []>} : vector<32x32xf32>, vector<32x128xf32>, vector<32x128xf32> -> vector<32x128xf32>
    %94 = vector.extract_strided_slice %2 {offsets = [160, 0], sizes = [32, 128], strides = [1, 1]} : vector<225x128xf32> to vector<32x128xf32>
    %95 = arith.addf %93, %94 : vector<32x128xf32>
    %c4_61 = arith.constant 4 : index
    %c0_62 = arith.constant 0 : index
    %c0_63 = arith.constant 0 : index
    %96 = vector.load %arg5[%c4_61, %c0_62, %c0_63] : memref<6x32x1xf32, #tpu.memory_space<vmem>>, vector<1x32x1xf32>
    %97 = vector.shape_cast %96 : vector<1x32x1xf32> to vector<32x1xf32>
    %98 = vector.broadcast %97 : vector<32x1xf32> to vector<32x128xf32>
    %99 = arith.addf %95, %98 : vector<32x128xf32>
    %cst_64 = arith.constant 0.00999999977 : f32
    %100 = vector.broadcast %cst_64 : f32 to vector<32x128xf32>
    %101 = arith.mulf %100, %99 : vector<32x128xf32>
    %102 = arith.maximumf %99, %101 : vector<32x128xf32>
    %c4_65 = arith.constant 4 : index
    %c0_66 = arith.constant 0 : index
    %c0_67 = arith.constant 0 : index
    %103 = vector.load %arg6[%c4_65, %c0_66, %c0_67] : memref<6x32x1xf32, #tpu.memory_space<vmem>>, vector<1x32x1xf32>
    %104 = vector.shape_cast %103 : vector<1x32x1xf32> to vector<32x1xf32>
    %105 = vector.broadcast %104 : vector<32x1xf32> to vector<32x128xf32>
    %106 = arith.mulf %102, %105 : vector<32x128xf32>
    %c4_68 = arith.constant 4 : index
    %c0_69 = arith.constant 0 : index
    %c0_70 = arith.constant 0 : index
    %107 = vector.load %arg7[%c4_68, %c0_69, %c0_70] : memref<6x32x1xf32, #tpu.memory_space<vmem>>, vector<1x32x1xf32>
    %108 = vector.shape_cast %107 : vector<1x32x1xf32> to vector<32x1xf32>
    %109 = vector.broadcast %108 : vector<32x1xf32> to vector<32x128xf32>
    %110 = arith.addf %106, %109 : vector<32x128xf32>
    %111 = arith.addf %90, %110 : vector<32x128xf32>
    %c5 = arith.constant 5 : index
    %c0_71 = arith.constant 0 : index
    %c0_72 = arith.constant 0 : index
    %112 = vector.load %arg4[%c5, %c0_71, %c0_72] : memref<6x32x32xf32, #tpu.memory_space<vmem>>, vector<1x32x32xf32>
    %113 = vector.shape_cast %112 : vector<1x32x32xf32> to vector<32x32xf32>
    %cst_73 = arith.constant dense<0.000000e+00> : vector<32x128xf32>
    %114 = tpu.matmul %113, %111, %cst_73 {dimension_numbers = #tpu.dot_dimension_numbers<[1], [0], [0], [1], [0, 0, 1, 1], [], []>} : vector<32x32xf32>, vector<32x128xf32>, vector<32x128xf32> -> vector<32x128xf32>
    %115 = vector.extract_strided_slice %2 {offsets = [192, 0], sizes = [32, 128], strides = [1, 1]} : vector<225x128xf32> to vector<32x128xf32>
    %116 = arith.addf %114, %115 : vector<32x128xf32>
    %c5_74 = arith.constant 5 : index
    %c0_75 = arith.constant 0 : index
    %c0_76 = arith.constant 0 : index
    %117 = vector.load %arg5[%c5_74, %c0_75, %c0_76] : memref<6x32x1xf32, #tpu.memory_space<vmem>>, vector<1x32x1xf32>
    %118 = vector.shape_cast %117 : vector<1x32x1xf32> to vector<32x1xf32>
    %119 = vector.broadcast %118 : vector<32x1xf32> to vector<32x128xf32>
    %120 = arith.addf %116, %119 : vector<32x128xf32>
    %cst_77 = arith.constant 0.00999999977 : f32
    %121 = vector.broadcast %cst_77 : f32 to vector<32x128xf32>
    %122 = arith.mulf %121, %120 : vector<32x128xf32>
    %123 = arith.maximumf %120, %122 : vector<32x128xf32>
    %c5_78 = arith.constant 5 : index
    %c0_79 = arith.constant 0 : index
    %c0_80 = arith.constant 0 : index
    %124 = vector.load %arg6[%c5_78, %c0_79, %c0_80] : memref<6x32x1xf32, #tpu.memory_space<vmem>>, vector<1x32x1xf32>
    %125 = vector.shape_cast %124 : vector<1x32x1xf32> to vector<32x1xf32>
    %126 = vector.broadcast %125 : vector<32x1xf32> to vector<32x128xf32>
    %127 = arith.mulf %123, %126 : vector<32x128xf32>
    %c5_81 = arith.constant 5 : index
    %c0_82 = arith.constant 0 : index
    %c0_83 = arith.constant 0 : index
    %128 = vector.load %arg7[%c5_81, %c0_82, %c0_83] : memref<6x32x1xf32, #tpu.memory_space<vmem>>, vector<1x32x1xf32>
    %129 = vector.shape_cast %128 : vector<1x32x1xf32> to vector<32x1xf32>
    %130 = vector.broadcast %129 : vector<32x1xf32> to vector<32x128xf32>
    %131 = arith.addf %127, %130 : vector<32x128xf32>
    %132 = arith.addf %111, %131 : vector<32x128xf32>
    %c0_84 = arith.constant 0 : index
    %c0_85 = arith.constant 0 : index
    %133 = vector.load %arg8[%c0_84, %c0_85] : memref<32x1xf32, #tpu.memory_space<vmem>>, vector<32x1xf32>
    %134 = vector.broadcast %133 : vector<32x1xf32> to vector<32x128xf32>
    %135 = arith.mulf %132, %134 : vector<32x128xf32>
    %cst_86 = arith.constant dense<0.000000e+00> : vector<128xf32>
    %136 = vector.multi_reduction <add>, %135, %cst_86 [0] : vector<32x128xf32> to vector<128xf32>
    %137 = vector.shape_cast %136 : vector<128xf32> to vector<1x128xf32>
    %138 = vector.extract_strided_slice %2 {offsets = [224, 0], sizes = [1, 128], strides = [1, 1]} : vector<225x128xf32> to vector<1x128xf32>
    %139 = arith.addf %137, %138 : vector<1x128xf32>
    %c0_87 = arith.constant 0 : index
    %c0_88 = arith.constant 0 : index
    %140 = vector.load %arg9[%c0_87, %c0_88] : memref<1x1xf32, #tpu.memory_space<vmem>>, vector<1x1xf32>
    %141 = vector.broadcast %140 : vector<1x1xf32> to vector<1x128xf32>
    %142 = arith.addf %139, %141 : vector<1x128xf32>
    %143 = arith.negf %142 : vector<1x128xf32>
    %144 = math.exp %143 : vector<1x128xf32>
    %cst_89 = arith.constant 1.000000e+00 : f32
    %145 = vector.broadcast %cst_89 : f32 to vector<1x128xf32>
    %146 = arith.addf %145, %144 : vector<1x128xf32>
    %147 = arith.divf %145, %146 : vector<1x128xf32>
    %c0_90 = arith.constant 0 : index
    %c0_91 = arith.constant 0 : index
    %148 = vector.load %arg10[%c0_90, %c0_91] : memref<1x128xf32, #tpu.memory_space<vmem>>, vector<1x128xf32>
    tpu.vector_store %arg10[%c0_90, %c0_91], %147 {strides = array<i32>} : memref<1x128xf32, #tpu.memory_space<vmem>>, vector<1x128xf32>,
    return
  }
  func.func @transform_0(%arg0: i32) -> (i32, i32) {
    %c0_i32 = arith.constant 0 : i32
    %c0_i32_0 = arith.constant 0 : i32
    return %c0_i32, %arg0 : i32, i32
  }
  func.func @transform_1(%arg0: i32) -> (i32, i32) {
    %c0_i32 = arith.constant 0 : i32
    %c0_i32_0 = arith.constant 0 : i32
    %c0_i32_1 = arith.constant 0 : i32
    return %c0_i32, %c0_i32_0 : i32, i32
  }
  func.func @transform_2(%arg0: i32) -> (i32, i32) {
    %c0_i32 = arith.constant 0 : i32
    %c0_i32_0 = arith.constant 0 : i32
    %c0_i32_1 = arith.constant 0 : i32
    return %c0_i32, %c0_i32_0 : i32, i32
  }
  func.func @transform_3(%arg0: i32) -> (i32, i32, i32) {
    %c0_i32 = arith.constant 0 : i32
    %c0_i32_0 = arith.constant 0 : i32
    %c0_i32_1 = arith.constant 0 : i32
    %c0_i32_2 = arith.constant 0 : i32
    return %c0_i32, %c0_i32_0, %c0_i32_1 : i32, i32, i32
  }
  func.func @transform_4(%arg0: i32) -> (i32, i32, i32) {
    %c0_i32 = arith.constant 0 : i32
    %c0_i32_0 = arith.constant 0 : i32
    %c0_i32_1 = arith.constant 0 : i32
    %c0_i32_2 = arith.constant 0 : i32
    return %c0_i32, %c0_i32_0, %c0_i32_1 : i32, i32, i32
  }
  func.func @transform_5(%arg0: i32) -> (i32, i32, i32) {
    %c0_i32 = arith.constant 0 : i32
    %c0_i32_0 = arith.constant 0 : i32
    %c0_i32_1 = arith.constant 0 : i32
    %c0_i32_2 = arith.constant 0 : i32
    return %c0_i32, %c0_i32_0, %c0_i32_1 : i32, i32, i32
  }
  func.func @transform_6(%arg0: i32) -> (i32, i32, i32) {
    %c0_i32 = arith.constant 0 : i32
    %c0_i32_0 = arith.constant 0 : i32
    %c0_i32_1 = arith.constant 0 : i32
    %c0_i32_2 = arith.constant 0 : i32
    return %c0_i32, %c0_i32_0, %c0_i32_1 : i32, i32, i32
  }
  func.func @transform_7(%arg0: i32) -> (i32, i32) {
    %c0_i32 = arith.constant 0 : i32
    %c0_i32_0 = arith.constant 0 : i32
    %c0_i32_1 = arith.constant 0 : i32
    return %c0_i32, %c0_i32_0 : i32, i32
  }
  func.func @transform_8(%arg0: i32) -> (i32, i32) {
    %c0_i32 = arith.constant 0 : i32
    %c0_i32_0 = arith.constant 0 : i32
    %c0_i32_1 = arith.constant 0 : i32
    return %c0_i32, %c0_i32_0 : i32, i32
  }
  func.func @transform_9(%arg0: i32) -> (i32, i32) {
    %c0_i32 = arith.constant 0 : i32
    %c0_i32_0 = arith.constant 0 : i32
    return %c0_i32, %arg0 : i32, i32
  }
}

</mosaic_0001>

<bundles_post_ra>
// kernel: tpu_custom_call.1
= control target key start
LH: loop header
LB: loop body
LE: loop exit
PB: predicated region body
PF: predicated region fallthrough
CT: control target
= control target key end

     0   :  { %s2867_s0 = inlined_call_operand.vmem [shape: f32[65,128], index: 0, kind: input, shape index: {}]   ;;  %s2868_s1 = inlined_call_operand.vmem [shape: f32[225,65], index: 1, kind: input, shape index: {}]   ;;  %s2869_s2 = inlined_call_operand.vmem [shape: f32[32,1], index: 2, kind: input, shape index: {}]   ;;  %s2870_s3 = inlined_call_operand.vmem [shape: f32[6,32,32], index: 3, kind: input, shape index: {}]   ;;  %s2871_s4 = inlined_call_operand.vmem [shape: f32[6,32,1], index: 4, kind: input, shape index: {}]   ;;  %s2872_s5 = inlined_call_operand.vmem [shape: f32[6,32,1], index: 5, kind: input, shape index: {}]   ;;  %s2873_s6 = inlined_call_operand.vmem [shape: f32[6,32,1], index: 6, kind: input, shape index: {}]   ;;  %s2874_s7 = inlined_call_operand.vmem [shape: f32[32,1], index: 7, kind: input, shape index: {}]   ;;  %s2875_s8 = inlined_call_operand.<no memory space> [shape: f32[1,1], index: 8, kind: input, shape index: {}]   ;;  %s2876_s9 = inlined_call_operand.hbm [shape: f32[1,128], index: 9, kind: output, shape index: {}]  }
   0x1   :  { %v14_v0 = vstv %s2875_s8 }
   0x2   :  { %15 = vst [vmem:[#allocation2] sm:$0x1] %v14_v0 }
   0x3   :  { %v378_v1 = vld [vmem:[%s2869_s2 + $0x18] sm:$0xff]  ;;  %v376_v2 = vld [vmem:[%s2869_s2 + $0x8] sm:$0xff]  ;;  %v43_v3 = vld [vmem:[%s2867_s0 + $0x40] sm:$0x1]  ;;  %v2136_v4 = vmov 0   ;;  %vm161_vm0 = vcmask 1040384  }
   0x4   :  { %2109 = vset.pattern.permute.xlu1 %v2136_v4  ;;  %2108 = vset.pattern.permute.xlu0 %v2136_v4  ;;  %v2137_v5 = vmov 0.0   ;;  %v42_v6 = vld [vmem:[%s2867_s0 + $0x38] sm:$0xff]  ;;  %v377_v7 = vld [vmem:[%s2869_s2 + $0x10] sm:$0xff]  ;;  %v375_v8 = vld [vmem:[%s2869_s2] sm:$0xff]  ;;  %vm2138_vm1 = vmmov 0   ;;  %vm73_vm2 = vcmask 531456  }
   0x5   :  { %1897 = vmatprep.subr.mxu0 %v2137_v5  ;;  %396 = vperm.xlu0 %2108, %v378_v1   ;;  %v41_v9 = vld [vmem:[%s2867_s0 + $0x30] sm:$0xff]  ;;  %v40_v10 = vld [vmem:[%s2867_s0 + $0x28] sm:$0xff]  ;;  %v508_v11 = vld [vmem:[%s2871_s4 + $0x18] sm:$0xff] }
   0x6   :  { %386 = vperm.xlu1 %2109, %v376_v2   ;;  %1898 = vmatpush3.msk.msra.mxu0 %vm161_vm0, %v43_v3  ;;  %v507_v12 = vld [vmem:[%s2871_s4 + $0x10] sm:$0xff]  ;;  %v39_v13 = vld [vmem:[%s2867_s0 + $0x20] sm:$0xff]  ;;  %v38_v14 = vld [vmem:[%s2867_s0 + $0x18] sm:$0xff] }
   0x7   :  { %1899 = vmatprep.subr.mxu0 %v2137_v5  ;;  %1915 = vmatprep.mubr.msk.f32.mxu0 %vm2138_vm1, %v2137_v5  ;;  %v506_v15 = vld [vmem:[%s2871_s4 + $0x8] sm:$0xff]  ;;  %v505_v16 = vld [vmem:[%s2871_s4] sm:$0xff]  ;;  %v37_v17 = vld [vmem:[%s2867_s0 + $0x10] sm:$0xff] }
   0x8   :  { %1900 = vmatpush3.msra.mxu0 %v42_v6  ;;  %2086 = vmatprep.subr.mxu1 %v2137_v5  ;;  %v36_v18 = vld [vmem:[%s2867_s0 + $0x8] sm:$0xff]  ;;  %v544_v19 = vld [vmem:[%s2872_s5 + $0x18] sm:$0xff]  ;;  %v543_v20 = vld [vmem:[%s2872_s5 + $0x10] sm:$0xff] }
   0x9   :  { %1901 = vmatprep.subr.mxu0 %v2137_v5  ;;  %391 = vperm.xlu0 %2108, %v377_v7   ;;  %v35_v21 = vld [vmem:[%s2867_s0] sm:$0xff]  ;;  %v572_v23 = vld [vmem:[%s2873_s6 + $0x18] sm:$0xff]  ;;  %v542_v24 = vld [vmem:[%s2872_s5 + $0x8] sm:$0xff] }
   0xa   :  { %381 = vperm.xlu1 %2109, %v375_v8   ;;  %1902 = vmatpush3.msra.mxu0 %v41_v9  ;;  %v44_v22 = vld [vmem:[%s2868_s1] sm:$0xff]  ;;  %v45_v25 = vld [vmem:[%s2868_s1 + $0x8] sm:$0xff]  ;;  %v571_v26 = vld [vmem:[%s2873_s6 + $0x10] sm:$0xff] }
   0xb   :  { %1903 = vmatprep.subr.mxu0 %v2137_v5  ;;  %2095 = vmatpush3.msk.msra.mxu1 %vm161_vm0, %v43_v3  ;;  %v541_v27 = vld [vmem:[%s2872_s5] sm:$0xff]  ;;  %v46_v28 = vld [vmem:[%s2868_s1 + $0x10] sm:$0xff]  ;;  %v570_v29 = vld [vmem:[%s2873_s6 + $0x8] sm:$0xff] }
   0xc   :  { %1904 = vmatpush3.msra.mxu0 %v40_v10  ;;  %2087 = vmatprep.subr.mxu1 %v2137_v5  ;;  %v569_v30 = vld [vmem:[%s2873_s6] sm:$0xff]  ;;  %v47_v31 = vld [vmem:[%s2868_s1 + $0x18] sm:$0xff] }
   0xd   :  { %1905 = vmatprep.subr.mxu0 %v2137_v5  ;;  %526 = vperm.xlu0 %2108, %v508_v11   ;;  %v1721_v32 = vld [vmem:[%s2871_s4 + $0x38] sm:$0xff] }
   0xe   :  { %521 = vperm.xlu1 %2109, %v507_v12   ;;  %1906 = vmatpush3.msra.mxu0 %v39_v13 }
   0xf   :  { %1907 = vmatprep.subr.mxu0 %v2137_v5  ;;  %2096 = vmatpush3.msra.mxu1 %v42_v6 }
  0x10   :  { %1908 = vmatpush3.msra.mxu0 %v38_v14  ;;  %2088 = vmatprep.subr.mxu1 %v2137_v5 }
  0x11   :  { %1909 = vmatprep.subr.mxu0 %v2137_v5  ;;  %516 = vperm.xlu0 %2108, %v506_v15  }
  0x12   :  { %511 = vperm.xlu1 %2109, %v505_v16   ;;  %1910 = vmatpush3.msra.mxu0 %v37_v17 }
  0x13   :  { %1911 = vmatprep.subr.mxu0 %v2137_v5  ;;  %2097 = vmatpush3.msra.mxu1 %v41_v9 }
  0x14   :  { %1912 = vmatpush3.msra.mxu0 %v36_v18  ;;  %2089 = vmatprep.subr.mxu1 %v2137_v5 }
  0x15   :  { %1913 = vmatprep.subr.mxu0 %v2137_v5  ;;  %562 = vperm.xlu0 %2108, %v544_v19  }
  0x16   :  { %557 = vperm.xlu1 %2109, %v543_v20   ;;  %1914 = vmatpush3.msra.mxu0 %v35_v21 }
  0x17   :  { %1916 = vmatmul.mubr.msk.f32.vlgmr.msra.gmra.mxu0 %vm73_vm2, %v44_v22  ;;  %2098 = vmatpush3.msra.mxu1 %v40_v10 }
  0x18   :  { %1918 = vmatprep.mubr.msk.f32.mxu0 %vm2138_vm1, %v2137_v5  ;;  %2090 = vmatprep.subr.mxu1 %v2137_v5 }
  0x19   :  { %590 = vperm.xlu0 %2108, %v572_v23   ;;  %2099 = vmatpush3.msra.mxu1 %v39_v13 }
  0x1a   :  { %552 = vperm.xlu1 %2109, %v542_v24   ;;  %2091 = vmatprep.subr.mxu1 %v2137_v5 }
  0x1b   :  { %1919 = vmatmul.mubr.msk.f32.gmra.mxu0 %vm73_vm2, %v45_v25  ;;  %2100 = vmatpush3.msra.mxu1 %v38_v14 }
  0x1c   :  { %1921 = vmatprep.mubr.msk.f32.mxu0 %vm2138_vm1, %v2137_v5  ;;  %2092 = vmatprep.subr.mxu1 %v2137_v5 }
  0x1d   :  { %585 = vperm.xlu0 %2108, %v571_v26   ;;  %2101 = vmatpush3.msra.mxu1 %v37_v17 }
  0x1e   :  { %547 = vperm.xlu1 %2109, %v541_v27   ;;  %2093 = vmatprep.subr.mxu1 %v2137_v5 }
  0x1f   :  { %1922 = vmatmul.mubr.msk.f32.gmra.mxu0 %vm73_vm2, %v46_v28  ;;  %2102 = vmatpush3.msra.mxu1 %v36_v18 }
  0x20   :  { %1924 = vmatprep.mubr.msk.f32.mxu0 %vm2138_vm1, %v2137_v5  ;;  %2094 = vmatprep.subr.mxu1 %v2137_v5 }
  0x21   :  { %580 = vperm.xlu0 %2108, %v570_v29   ;;  %2103 = vmatpush3.msra.mxu1 %v35_v21 }
  0x22   :  { %575 = vperm.xlu1 %2109, %v569_v30   ;;  %1978 = vmatprep.mubr.msk.f32.mxu1 %vm2138_vm1, %v2137_v5 }
  0x23   :  { %16 = vsyncpa [#allocation4], 0  ;;  %1925 = vmatmul.mubr.msk.f32.gmra.mxu0 %vm73_vm2, %v47_v31  ;;  %v1720_v33 = vld [vmem:[%s2871_s4 + $0x30] sm:$0xff]  ;;  %v1719_v34 = vld [vmem:[%s2871_s4 + $0x28] sm:$0xff]  ;;  %vm407_vm3 = vcmask 261120  }
  0x24   :  { %1927 = vmatprep.mubr.msk.f32.mxu0 %vm2138_vm1, %v2137_v5  ;;  %v1718_v35 = vld [vmem:[%s2871_s4 + $0x20] sm:$0xff]  ;;  %v1725_v36 = vld [vmem:[%s2872_s5 + $0x38] sm:$0xff]  ;;  %v1724_v37 = vld [vmem:[%s2872_s5 + $0x30] sm:$0xff] }
  0x25   :  { %725 = vperm.xlu0 %2108, %v1721_v32   ;;  %v1729_v38 = vld [vmem:[%s2873_s6 + $0x38] sm:$0xff]  ;;  %v1723_v39 = vld [vmem:[%s2872_s5 + $0x28] sm:$0xff]  ;;  %v1728_v40 = vld [vmem:[%s2873_s6 + $0x30] sm:$0xff] }
  0x26   :  { %720 = vperm.xlu1 %2109, %v1720_v33   ;;  %v1722_v41 = vld [vmem:[%s2872_s5 + $0x20] sm:$0xff]  ;;  %v1727_v42 = vld [vmem:[%s2873_s6 + $0x28] sm:$0xff]  ;;  %v1741_v44 = vld [vmem:[%s2871_s4 + $0x58] sm:$0xff] }
  0x27   :  { %v1726_v43 = vld [vmem:[%s2873_s6 + $0x20] sm:$0xff]  ;;  %v1740_v45 = vld [vmem:[%s2871_s4 + $0x50] sm:$0xff]  ;;  %v1739_v46 = vld [vmem:[%s2871_s4 + $0x48] sm:$0xff] }
  0x28   :  { %v1738_v47 = vld [vmem:[%s2871_s4 + $0x40] sm:$0xff]  ;;  %v1745_v48 = vld [vmem:[%s2872_s5 + $0x58] sm:$0xff]  ;;  %v1744_v49 = vld [vmem:[%s2872_s5 + $0x50] sm:$0xff] }
  0x29   :  { %715 = vperm.xlu0 %2108, %v1719_v34   ;;  %v1749_v50 = vld [vmem:[%s2873_s6 + $0x58] sm:$0xff]  ;;  %v1743_v51 = vld [vmem:[%s2872_s5 + $0x48] sm:$0xff]  ;;  %v1748_v52 = vld [vmem:[%s2873_s6 + $0x50] sm:$0xff] }
  0x2a   :  { %710 = vperm.xlu1 %2109, %v1718_v35   ;;  %v1742_v53 = vld [vmem:[%s2872_s5 + $0x40] sm:$0xff]  ;;  %v65_v54 = vld [vmem:[%s2868_s1 + $0xa8] sm:$0xff]  ;;  %v66_v57 = vld [vmem:[%s2868_s1 + $0xb0] sm:$0xff] }
  0x2b   :  { %1979 = vmatmul.mubr.msk.f32.vlgmr.msra.gmra.mxu1 %vm73_vm2, %v65_v54  ;;  %v1747_v55 = vld [vmem:[%s2873_s6 + $0x48] sm:$0xff]  ;;  %v1746_v56 = vld [vmem:[%s2873_s6 + $0x40] sm:$0xff]  ;;  %v1761_v58 = vld [vmem:[%s2871_s4 + $0x78] sm:$0xff] }
  0x2c   :  { %1981 = vmatprep.mubr.msk.f32.mxu1 %vm2138_vm1, %v2137_v5  ;;  %v1760_v59 = vld [vmem:[%s2871_s4 + $0x70] sm:$0xff]  ;;  %v67_v60 = vld [vmem:[%s2868_s1 + $0xb8] sm:$0xff]  ;;  %v1759_v61 = vld [vmem:[%s2871_s4 + $0x68] sm:$0xff] }
  0x2d   :  { %762 = vperm.xlu0 %2108, %v1725_v36   ;;  %v1758_v62 = vld [vmem:[%s2871_s4 + $0x60] sm:$0xff]  ;;  %v1765_v0 = vld [vmem:[%s2872_s5 + $0x78] sm:$0xff]  ;;  %v1764_v1 = vld [vmem:[%s2872_s5 + $0x70] sm:$0xff] }
  0x2e   :  { %757 = vperm.xlu1 %2109, %v1724_v37   ;;  %v68_v63 = vld [vmem:[%s2868_s1 + $0xc0] sm:$0xff]  ;;  %v69_v2 = vld [vmem:[%s2868_s1 + $0xc8] sm:$0xff]  ;;  %v1769_v3 = vld [vmem:[%s2873_s6 + $0x78] sm:$0xff] }
  0x2f   :  { %1982 = vmatmul.mubr.msk.f32.gmra.mxu1 %vm73_vm2, %v66_v57  ;;  %v1763_v4 = vld [vmem:[%s2872_s5 + $0x68] sm:$0xff]  ;;  %v70_v6 = vld [vmem:[%s2868_s1 + $0xd0] sm:$0xff]  ;;  %v1762_v8 = vld [vmem:[%s2872_s5 + $0x60] sm:$0xff] }
  0x30   :  { %1984 = vmatprep.mubr.msk.f32.mxu1 %vm2138_vm1, %v2137_v5  ;;  %v1768_v7 = vld [vmem:[%s2873_s6 + $0x70] sm:$0xff]  ;;  %v48_v9 = vld [vmem:[%s2868_s1 + $0x20] sm:$0xff]  ;;  %v71_v10 = vld [vmem:[%s2868_s1 + $0xd8] sm:$0xff] }
  0x31   :  { %791 = vperm.xlu0 %2108, %v1729_v38   ;;  %1928 = vmatmul.mubr.msk.f32.gmra.mxu0 %vm73_vm2, %v48_v9  ;;  %v1767_v11 = vld [vmem:[%s2873_s6 + $0x68] sm:$0xff]  ;;  %v1766_v12 = vld [vmem:[%s2873_s6 + $0x60] sm:$0xff]  ;;  %v1781_v15 = vld [vmem:[%s2871_s4 + $0x98] sm:$0xff] }
  0x32   :  { %752 = vperm.xlu1 %2109, %v1723_v39   ;;  %1930 = vmatprep.mubr.msk.f32.mxu0 %vm2138_vm1, %v2137_v5  ;;  %v49_v13 = vld [vmem:[%s2868_s1 + $0x28] sm:$0xff]  ;;  %v72_v14 = vld [vmem:[%s2868_s1 + $0xe0] sm:$0x1]  ;;  %v1780_v16 = vld [vmem:[%s2871_s4 + $0x90] sm:$0xff] }
  0x33   :  { %1985 = vmatmul.mubr.msk.f32.gmra.mxu1 %vm73_vm2, %v67_v60  ;;  %v50_v17 = vld [vmem:[%s2868_s1 + $0x30] sm:$0xff]  ;;  %v403_v18 = vld [vmem:[%s2870_s3] sm:$0xff]  ;;  %v1779_v19 = vld [vmem:[%s2871_s4 + $0x88] sm:$0xff] }
  0x34   :  { %1987 = vmatprep.mubr.msk.f32.mxu1 %vm2138_vm1, %v2137_v5  ;;  %v1778_v20 = vld [vmem:[%s2871_s4 + $0x80] sm:$0xff]  ;;  %v51_v21 = vld [vmem:[%s2868_s1 + $0x38] sm:$0xff]  ;;  %v1784_v23 = vld [vmem:[%s2872_s5 + $0x90] sm:$0xff] }
  0x35   :  { %786 = vperm.xlu0 %2108, %v1728_v40   ;;  %1931 = vmatmul.mubr.msk.f32.gmra.mxu0 %vm73_vm2, %v49_v13  ;;  %v1785_v22 = vld [vmem:[%s2872_s5 + $0x98] sm:$0xff]  ;;  %v1783_v25 = vld [vmem:[%s2872_s5 + $0x88] sm:$0xff]  ;;  %v1788_v26 = vld [vmem:[%s2873_s6 + $0x90] sm:$0xff] }
  0x36   :  { %747 = vperm.xlu1 %2109, %v1722_v41   ;;  %1933 = vmatprep.mubr.msk.f32.mxu0 %vm2138_vm1, %v2137_v5  ;;  %v1789_v24 = vld [vmem:[%s2873_s6 + $0x98] sm:$0xff]  ;;  %v1782_v27 = vld [vmem:[%s2872_s5 + $0x80] sm:$0xff]  ;;  %v1787_v28 = vld [vmem:[%s2873_s6 + $0x88] sm:$0xff] }
  0x37   :  { %1988 = vmatmul.mubr.msk.f32.gmra.mxu1 %vm73_vm2, %v68_v63  ;;  %v1786_v29 = vld [vmem:[%s2873_s6 + $0x80] sm:$0xff]  ;;  %v1799_v31 = vld [vmem:[%s2871_s4 + $0xa8] sm:$0xff]  ;;  %v1800_v32 = vld [vmem:[%s2871_s4 + $0xb0] sm:$0xff] }
  0x38   :  { %1990 = vmatprep.mubr.msk.f32.mxu1 %vm2138_vm1, %v2137_v5  ;;  %v1798_v30 = vld [vmem:[%s2871_s4 + $0xa0] sm:$0xff]  ;;  %v1801_v33 = vld [vmem:[%s2871_s4 + $0xb8] sm:$0xff]  ;;  %v1803_v35 = vld [vmem:[%s2872_s5 + $0xa8] sm:$0xff] }
  0x39   :  { %781 = vperm.xlu0 %2108, %v1727_v42   ;;  %1934 = vmatmul.mubr.msk.f32.gmra.mxu0 %vm73_vm2, %v50_v17  ;;  %v1802_v34 = vld [vmem:[%s2872_s5 + $0xa0] sm:$0xff]  ;;  %v1804_v36 = vld [vmem:[%s2872_s5 + $0xb0] sm:$0xff]  ;;  %v1807_v38 = vld [vmem:[%s2873_s6 + $0xa8] sm:$0xff] }
  0x3a   :  { %776 = vperm.xlu1 %2109, %v1726_v43   ;;  %1936 = vmatprep.mubr.msk.f32.mxu0 %vm2138_vm1, %v2137_v5  ;;  %v1806_v37 = vld [vmem:[%s2873_s6 + $0xa0] sm:$0xff]  ;;  %v1805_v39 = vld [vmem:[%s2872_s5 + $0xb8] sm:$0xff]  ;;  %v1808_v40 = vld [vmem:[%s2873_s6 + $0xb0] sm:$0xff] }
  0x3b   :  { %1991 = vmatmul.mubr.msk.f32.gmra.mxu1 %vm73_vm2, %v69_v2  ;;  %v1809_v41 = vld [vmem:[%s2873_s6 + $0xb8] sm:$0xff]  ;;  %v1606_v42 = vld [vmem:[%s2874_s7] sm:$0xff]  ;;  %v1607_v43 = vld [vmem:[%s2874_s7 + $0x8] sm:$0xff] }
  0x3c   :  { %1993 = vmatprep.mubr.msk.f32.mxu1 %vm2138_vm1, %v2137_v5  ;;  %v404_v63 = vld [vmem:[%s2870_s3 + $0x8] sm:$0xff] }
  0x3d   :  { %926 = vperm.xlu0 %2108, %v1741_v44   ;;  %1937 = vmatmul.mubr.msk.f32.gmra.mxu0 %vm73_vm2, %v51_v21  ;;  %v1608_v44 = vld [vmem:[%s2874_s7 + $0x10] sm:$0xff] }
  0x3e   :  { %921 = vperm.xlu1 %2109, %v1740_v45   ;;  %1939 = vmatprep.mubr.msk.f32.mxu0 %vm2138_vm1, %v2137_v5  ;;  %v1609_v45 = vld [vmem:[%s2874_s7 + $0x18] sm:$0xff] }
  0x3f   :  { %1994 = vmatmul.mubr.msk.f32.gmra.mxu1 %vm73_vm2, %v70_v6 }
  0x40   :  { %1996 = vmatprep.mubr.msk.f32.mxu1 %vm2138_vm1, %v2137_v5 }
  0x41   :  { %916 = vperm.xlu0 %2108, %v1739_v46   ;;  %v1644_v46 = vld [vmem:[#allocation2] sm:$0x1] }
  0x42   :  { %911 = vperm.xlu1 %2109, %v1738_v47  }
  0x43   :  { %1997 = vmatmul.mubr.msk.f32.gmra.mxu1 %vm73_vm2, %v71_v10 }
  0x44   :  { %1999 = vmatprep.mubr.msk.f32.mxu1 %vm2138_vm1, %v2137_v5 }
  0x45   :  { %963 = vperm.xlu0 %2108, %v1745_v48  }
  0x46   :  { %958 = vperm.xlu1 %2109, %v1744_v49  }
  0x47   :  { %2000 = vmatmul.mubr.msk.f32.gmra.mxu1 %vm73_vm2, %v72_v14 }
  0x48   :  { %2010 = vmatprep.mubr.msk.f32.mxu1 %vm407_vm3, %v403_v18 }
  0x49   :  { %992 = vperm.xlu0 %2108, %v1749_v50  }
  0x4a   :  { %953 = vperm.xlu1 %2109, %v1743_v51  }
  0x4d   :  { %987 = vperm.xlu0 %2108, %v1748_v52  }
  0x4e   :  { %948 = vperm.xlu1 %2109, %v1742_v53  }
  0x51   :  { %982 = vperm.xlu0 %2108, %v1747_v55  }
  0x52   :  { %977 = vperm.xlu1 %2109, %v1746_v56  }
  0x55   :  { %1127 = vperm.xlu0 %2108, %v1761_v58  }
  0x56   :  { %1122 = vperm.xlu1 %2109, %v1760_v59  }
  0x59   :  { %1117 = vperm.xlu0 %2108, %v1759_v61  }
  0x5a   :  { %1112 = vperm.xlu1 %2109, %v1758_v62  }
  0x5d   :  { %1164 = vperm.xlu0 %2108, %v1765_v0   ;;  %v405_v0 = vld [vmem:[%s2870_s3 + $0x10] sm:$0xff] }
  0x5e   :  { %1159 = vperm.xlu1 %2109, %v1764_v1   ;;  %v406_v1 = vld [vmem:[%s2870_s3 + $0x18] sm:$0xff] }
  0x61   :  { %1193 = vperm.xlu0 %2108, %v1769_v3  }
  0x62   :  { %1154 = vperm.xlu1 %2109, %v1763_v4  }
  0x65   :  { %1188 = vperm.xlu0 %2108, %v1768_v7  }
  0x66   :  { %1149 = vperm.xlu1 %2109, %v1762_v8  }
  0x69   :  { %1183 = vperm.xlu0 %2108, %v1767_v11  }
  0x6a   :  { %1178 = vperm.xlu1 %2109, %v1766_v12  }
  0x6d   :  { %1328 = vperm.xlu0 %2108, %v1781_v15  }
  0x6e   :  { %1323 = vperm.xlu1 %2109, %v1780_v16  }
  0x71   :  { %1318 = vperm.xlu0 %2108, %v1779_v19  }
  0x72   :  { %1313 = vperm.xlu1 %2109, %v1778_v20  }
  0x75   :  { %1365 = vperm.xlu0 %2108, %v1785_v22  }
  0x76   :  { %1360 = vperm.xlu1 %2109, %v1784_v23  }
  0x79   :  { %1394 = vperm.xlu0 %2108, %v1789_v24  }
  0x7a   :  { %1355 = vperm.xlu1 %2109, %v1783_v25  }
  0x7d   :  { %1389 = vperm.xlu0 %2108, %v1788_v26  }
  0x7e   :  { %1350 = vperm.xlu1 %2109, %v1782_v27   ;;  %v52_v27 = vld [vmem:[%s2868_s1 + $0x40] sm:$0xff] }
  0x7f   :  { %1940 = vmatmul.mubr.msk.f32.gmra.mxu0 %vm73_vm2, %v52_v27 }
  0x80   :  { %v397_v51 = vpop.permute.xlu0 %396  ;;  %1942 = vmatprep.mubr.msk.f32.mxu0 %vm2138_vm1, %v2137_v5 }
  0x81   :  { %1384 = vperm.xlu0 %2108, %v1787_v28   ;;  %v387_v54 = vpop.permute.xlu1 %386  ;;  %v53_v28 = vld [vmem:[%s2868_s1 + $0x48] sm:$0xff] }
  0x82   :  { %1379 = vperm.xlu1 %2109, %v1786_v29   ;;  %v54_v29 = vld [vmem:[%s2868_s1 + $0x50] sm:$0xff] }
  0x83   :  { %1943 = vmatmul.mubr.msk.f32.gmra.mxu0 %vm73_vm2, %v53_v28 }
  0x84   :  { %v392_v57 = vpop.permute.xlu0 %391  ;;  %1945 = vmatprep.mubr.msk.f32.mxu0 %vm2138_vm1, %v2137_v5 }
  0x85   :  { %1514 = vperm.xlu0 %2108, %v1798_v30   ;;  %v382_v61 = vpop.permute.xlu1 %381  ;;  %v1710_v30 = vld [vmem:[%s2870_s3 + $0x20] sm:$0xff] }
  0x86   :  { %1519 = vperm.xlu1 %2109, %v1799_v31   ;;  %v55_v31 = vld [vmem:[%s2868_s1 + $0x58] sm:$0xff] }
  0x87   :  { %1946 = vmatmul.mubr.msk.f32.gmra.mxu0 %vm73_vm2, %v54_v29 }
  0x88   :  { %1948 = vmatprep.mubr.msk.f32.mxu0 %vm2138_vm1, %v2137_v5 }
  0x89   :  { %1524 = vperm.xlu0 %2108, %v1800_v32   ;;  %v527_v32 = vpop.permute.xlu0 %526 }
  0x8a   :  { %1529 = vperm.xlu1 %2109, %v1801_v33   ;;  %v522_v33 = vpop.permute.xlu1 %521 }
  0x8b   :  { %1949 = vmatmul.mubr.msk.f32.gmra.mxu0 %vm73_vm2, %v55_v31 }
  0x8c   :  { %1951 = vmatprep.mubr.msk.f32.mxu0 %vm2138_vm1, %v2137_v5 }
  0x8d   :  { %1551 = vperm.xlu0 %2108, %v1802_v34   ;;  %v517_v34 = vpop.permute.xlu0 %516 }
  0x8e   :  { %1556 = vperm.xlu1 %2109, %v1803_v35   ;;  %v512_v35 = vpop.permute.xlu1 %511 }
  0x91   :  { %1561 = vperm.xlu0 %2108, %v1804_v36   ;;  %v563_v36 = vpop.permute.xlu0 %562 }
  0x92   :  { %1580 = vperm.xlu1 %2109, %v1806_v37   ;;  %v558_v37 = vpop.permute.xlu1 %557 }
  0x95   :  { %1585 = vperm.xlu0 %2108, %v1807_v38  }
  0x96   :  { %1566 = vperm.xlu1 %2109, %v1805_v39  }
  0x99   :  { %1590 = vperm.xlu0 %2108, %v1808_v40  }
  0x9a   :  { %1595 = vperm.xlu1 %2109, %v1809_v41  }
  0x9d   :  { %1612 = vperm.xlu0 %2108, %v1606_v42  }
  0x9e   :  { %1617 = vperm.xlu1 %2109, %v1607_v43   ;;  %v591_v43 = vpop.permute.xlu0 %590 }
  0xa1   :  { %1622 = vperm.xlu0 %2108, %v1608_v44  }
  0xa2   :  { %1627 = vperm.xlu1 %2109, %v1609_v45  }
  0xa5   :  { %1647 = vperm.xlu0 %2108, %v1644_v46  }
  0xd7   :  { %v231_v47 = vpop.f32.mrf.mxu0 }
  0xd8   :  { %v2592_v62 = vadd.f32 %v382_v61, %v231_v47 }
  0xd9   :  { %v1917_v48 = vpop.f32.mrf.mxu0 }
  0xda   :  { %v553_v48 = vpop.permute.xlu1 %552 }
  0xdb   :  { %v236_v49 = vpop.f32.mrf.mxu0 }
  0xdc   :  { %v2588_v60 = vadd.f32 %v387_v54, %v236_v49 }
  0xdd   :  { %v1920_v50 = vpop.f32.mrf.mxu0 }
  0xdf   :  { %v241_v52 = vpop.f32.mrf.mxu0 }
  0xe0   :  { %v2584_v59 = vadd.f32 %v392_v57, %v241_v52  ;;  %v586_v57 = vpop.permute.xlu0 %585 }
  0xe1   :  { %v1923_v53 = vpop.f32.mrf.mxu0 }
  0xe3   :  { %v246_v55 = vpop.f32.mrf.mxu0 }
  0xe4   :  { %v2582_v56 = vadd.f32 %v397_v51, %v246_v55 }
  0xe5   :  { %v1926_v58 = vpop.f32.mrf.mxu0 }
  0xe6   :  { %2002 = vmatprep.subr.mxu1 %v2582_v56 }
  0xe7   :  { %2003 = vmatpush3.msra.mxu1 %v2582_v56 }
  0xe8   :  { %2004 = vmatprep.subr.mxu1 %v2584_v59 }
  0xe9   :  { %2005 = vmatpush3.msra.mxu1 %v2584_v59 }
  0xea   :  { %2006 = vmatprep.subr.mxu1 %v2588_v60 }
  0xeb   :  { %2007 = vmatpush3.msra.mxu1 %v2588_v60  ;;  %v2610_v2 = vpop.f32.mrf.mxu1 }
  0xec   :  { %2008 = vmatprep.subr.mxu1 %v2592_v62 }
  0xed   :  { %2009 = vmatpush3.msra.mxu1 %v2592_v62  ;;  %v1980_v3 = vpop.f32.mrf.mxu1 }
  0xee   :  { %2011 = vmatmul.mubr.msk.f32.vlgmr.msra.gmra.mxu1 %vm407_vm3, %v404_v63 }
  0xef   :  { %2013 = vmatprep.mubr.msk.f32.mxu1 %vm407_vm3, %v405_v0  ;;  %v2612_v4 = vpop.f32.mrf.mxu1  ;;  %v548_v0 = vpop.permute.xlu1 %547 }
  0xf1   :  { %v1983_v6 = vpop.f32.mrf.mxu1  ;;  %v251_v15 = vpop.f32.mrf.mxu0 }
  0xf2   :  { %2014 = vmatmul.mubr.msk.f32.gmra.mxu1 %vm407_vm3, %v406_v1 }
  0xf3   :  { %v2614_v7 = vpop.f32.mrf.mxu1  ;;  %v1929_v17 = vpop.f32.mrf.mxu0  ;;  %2024 = vmatprep.mubr.msk.f32.mxu1 %vm407_vm3, %v1710_v30 }
  0xf5   :  { %v1986_v8 = vpop.f32.mrf.mxu1  ;;  %v256_v19 = vpop.f32.mrf.mxu0 }
  0xf7   :  { %v2616_v9 = vpop.f32.mrf.mxu1  ;;  %v1932_v21 = vpop.f32.mrf.mxu0 }
  0xf9   :  { %v1989_v10 = vpop.f32.mrf.mxu1  ;;  %v261_v23 = vpop.f32.mrf.mxu0 }
  0xfb   :  { %v2618_v11 = vpop.f32.mrf.mxu1  ;;  %v1935_v24 = vpop.f32.mrf.mxu0 }
  0xfd   :  { %v1992_v12 = vpop.f32.mrf.mxu1  ;;  %v266_v25 = vpop.f32.mrf.mxu0 }
  0xff   :  { %v2620_v13 = vpop.f32.mrf.mxu1  ;;  %v1938_v26 = vpop.f32.mrf.mxu0 }
 0x101   :  { %v1995_v14 = vpop.f32.mrf.mxu1 }
 0x102   :  { %v581_v14 = vpop.permute.xlu0 %580 }
 0x103   :  { %v2622_v16 = vpop.f32.mrf.mxu1 }
 0x105   :  { %v1998_v18 = vpop.f32.mrf.mxu1 }
 0x107   :  { %v2624_v20 = vpop.f32.mrf.mxu1 }
 0x109   :  { %v2001_v22 = vpop.f32.mrf.mxu1 }
 0x13f   :  { %v271_v24 = vpop.f32.mrf.mxu0 }
 0x1ae   :  { %v2012_v38 = vpop.f32.mrf.mxu1 }
 0x1af   :  { %v492_v39 = vadd.f32 %v2012_v38, %v256_v19  ;;  %v576_v19 = vpop.permute.xlu1 %575 }
 0x1b0   :  { %v486_v40 = vpop.f32.mrf.mxu1 }
 0x1b1   :  { %v530_v41 = vadd.f32 %v517_v34, %v492_v39  ;;  %v487_v42 = vadd.f32 %v486_v40, %v251_v15  ;;  %v58_v34 = vld [vmem:[%s2868_s1 + $0x70] sm:$0xff] }
 0x1b2   :  { %v2015_v44 = vpop.f32.mrf.mxu1 }
 0x1b3   :  { %v534_v45 = vmul.f32 0.01, %v530_v41  ;;  %v529_v46 = vadd.f32 %v512_v35, %v487_v42  ;;  %v502_v47 = vadd.f32 %v2015_v44, %v266_v25  ;;  %v1941_v25 = vpop.f32.mrf.mxu0  ;;  %v1730_v35 = vld [vmem:[%s2870_s3 + $0x40] sm:$0xff]  ;;  %v721_v38 = vpop.permute.xlu1 %720 }
 0x1b4   :  { %v496_v49 = vpop.f32.mrf.mxu1 }
 0x1b5   :  { %v533_v50 = vmul.f32 0.01, %v529_v46  ;;  %v532_v51 = vadd.f32 %v527_v32, %v502_v47  ;;  %v497_v52 = vadd.f32 %v496_v49, %v261_v23  ;;  %v538_v53 = vmax.f32 %v530_v41, %v534_v45  ;;  %v276_v26 = vpop.f32.mrf.mxu0  ;;  %v56_v32 = vld [vmem:[%s2868_s1 + $0x60] sm:$0xff] }
 0x1b6   :  { %1952 = vmatmul.mubr.msk.f32.gmra.mxu0 %vm73_vm2, %v56_v32 }
 0x1b7   :  { %v536_v54 = vmul.f32 0.01, %v532_v51  ;;  %v531_v55 = vadd.f32 %v522_v33, %v497_v52  ;;  %v537_v58 = vmax.f32 %v529_v46, %v533_v50  ;;  %v566_v1 = vmul.f32 %v553_v48, %v538_v53  ;;  %v1944_v27 = vpop.f32.mrf.mxu0  ;;  %1954 = vmatprep.mubr.msk.f32.mxu0 %vm2138_vm1, %v2137_v5  ;;  %v57_v33 = vld [vmem:[%s2868_s1 + $0x68] sm:$0xff]  ;;  %v711_v40 = vpop.permute.xlu1 %710 }
 0x1b9   :  { %v540_v61 = vmax.f32 %v532_v51, %v536_v54  ;;  %v535_v63 = vmul.f32 0.01, %v531_v55  ;;  %v565_v8 = vmul.f32 %v548_v0, %v537_v58  ;;  %v594_v18 = vadd.f32 %v581_v14, %v566_v1  ;;  %v281_v28 = vpop.f32.mrf.mxu0 }
 0x1ba   :  { %1955 = vmatmul.mubr.msk.f32.gmra.mxu0 %vm73_vm2, %v57_v33 }
 0x1bb   :  { %v568_v3 = vmul.f32 %v563_v36, %v540_v61  ;;  %v539_v6 = vmax.f32 %v531_v55, %v535_v63  ;;  %v593_v22 = vadd.f32 %v576_v19, %v565_v8  ;;  %v2664_v23 = vadd.f32 %v594_v18, %v2588_v60  ;;  %v1712_v60 = vld [vmem:[%s2870_s3 + $0x30] sm:$0xff]  ;;  %v1947_v29 = vpop.f32.mrf.mxu0  ;;  %1957 = vmatprep.mubr.msk.f32.mxu0 %vm2138_vm1, %v2137_v5  ;;  %v59_v36 = vld [vmem:[%s2868_s1 + $0x78] sm:$0xff]  ;;  %v758_v42 = vpop.permute.xlu1 %757 }
 0x1bd   :  { %v567_v10 = vmul.f32 %v558_v37, %v539_v6  ;;  %v596_v12 = vadd.f32 %v591_v43, %v568_v3  ;;  %v286_v30 = vpop.f32.mrf.mxu0  ;;  %v726_v37 = vpop.permute.xlu0 %725 }
 0x1be   :  { %1958 = vmatmul.mubr.msk.f32.gmra.mxu0 %vm73_vm2, %v58_v34 }
 0x1bf   :  { %v2655_v15 = vadd.f32 %v596_v12, %v2582_v56  ;;  %v595_v17 = vadd.f32 %v586_v57, %v567_v10  ;;  %v2669_v56 = vadd.f32 %v593_v22, %v2592_v62  ;;  %v1713_v62 = vld [vmem:[%s2870_s3 + $0x38] sm:$0xff]  ;;  %v1950_v31 = vpop.f32.mrf.mxu0  ;;  %1960 = vmatprep.mubr.msk.f32.mxu0 %vm2138_vm1, %v2137_v5  ;;  %v753_v53 = vpop.permute.xlu1 %752 }
 0x1c1   :  { %2016 = vmatprep.subr.mxu1 %v2655_v15  ;;  %v2659_v21 = vadd.f32 %v595_v17, %v2584_v59  ;;  %v1711_v59 = vld [vmem:[%s2870_s3 + $0x28] sm:$0xff]  ;;  %v716_v39 = vpop.permute.xlu0 %715 }
 0x1c2   :  { %2017 = vmatpush3.msra.mxu1 %v2655_v15  ;;  %1961 = vmatmul.mubr.msk.f32.gmra.mxu0 %vm73_vm2, %v59_v36 }
 0x1c3   :  { %2018 = vmatprep.subr.mxu1 %v2659_v21  ;;  %1963 = vmatprep.mubr.msk.f32.mxu0 %vm2138_vm1, %v2137_v5  ;;  %v748_v10 = vpop.permute.xlu1 %747 }
 0x1c4   :  { %2019 = vmatpush3.msra.mxu1 %v2659_v21 }
 0x1c5   :  { %2020 = vmatprep.subr.mxu1 %v2664_v23  ;;  %v763_v41 = vpop.permute.xlu0 %762 }
 0x1c6   :  { %2021 = vmatpush3.msra.mxu1 %v2664_v23 }
 0x1c7   :  { %2022 = vmatprep.subr.mxu1 %v2669_v56  ;;  %v777_v25 = vpop.permute.xlu1 %776 }
 0x1c8   :  { %2023 = vmatpush3.msra.mxu1 %v2669_v56 }
 0x1c9   :  { %2025 = vmatmul.mubr.msk.f32.vlgmr.msra.gmra.mxu1 %vm407_vm3, %v1711_v59  ;;  %v792_v48 = vpop.permute.xlu0 %791 }
 0x1ca   :  { %2027 = vmatprep.mubr.msk.f32.mxu1 %vm407_vm3, %v1712_v60 }
 0x1cd   :  { %2028 = vmatmul.mubr.msk.f32.gmra.mxu1 %vm407_vm3, %v1713_v62  ;;  %v787_v1 = vpop.permute.xlu0 %786 }
 0x1ce   :  { %2038 = vmatprep.mubr.msk.f32.mxu1 %vm407_vm3, %v1730_v35 }
 0x1d1   :  { %v782_v59 = vpop.permute.xlu0 %781 }
 0x276   :  { %v291_v29 = vpop.f32.mrf.mxu0 }
 0x289   :  { %v2026_v43 = vpop.f32.mrf.mxu1 }
 0x28a   :  { %v690_v44 = vadd.f32 %v2026_v43, %v276_v26  ;;  %v922_v43 = vpop.permute.xlu1 %921 }
 0x28b   :  { %v684_v45 = vpop.f32.mrf.mxu1 }
 0x28c   :  { %v729_v46 = vadd.f32 %v716_v39, %v690_v44  ;;  %v685_v47 = vadd.f32 %v684_v45, %v271_v24  ;;  %v62_v39 = vld [vmem:[%s2868_s1 + $0x90] sm:$0xff] }
 0x28d   :  { %v2029_v49 = vpop.f32.mrf.mxu1 }
 0x28e   :  { %v733_v50 = vmul.f32 0.01, %v729_v46  ;;  %v728_v51 = vadd.f32 %v711_v40, %v685_v47  ;;  %v700_v52 = vadd.f32 %v2029_v49, %v286_v30  ;;  %v1953_v30 = vpop.f32.mrf.mxu0  ;;  %v1750_v40 = vld [vmem:[%s2870_s3 + $0x60] sm:$0xff]  ;;  %v912_v45 = vpop.permute.xlu1 %911 }
 0x28f   :  { %v694_v54 = vpop.f32.mrf.mxu1 }
 0x290   :  { %v732_v55 = vmul.f32 0.01, %v728_v51  ;;  %v731_v57 = vadd.f32 %v726_v37, %v700_v52  ;;  %v695_v58 = vadd.f32 %v694_v54, %v281_v28  ;;  %v737_v61 = vmax.f32 %v729_v46, %v733_v50  ;;  %v296_v31 = vpop.f32.mrf.mxu0  ;;  %v60_v37 = vld [vmem:[%s2868_s1 + $0x80] sm:$0xff] }
 0x291   :  { %1964 = vmatmul.mubr.msk.f32.gmra.mxu0 %vm73_vm2, %v60_v37 }
 0x292   :  { %v735_v63 = vmul.f32 0.01, %v731_v57  ;;  %v730_v0 = vadd.f32 %v721_v38, %v695_v58  ;;  %v736_v3 = vmax.f32 %v728_v51, %v732_v55  ;;  %v766_v12 = vmul.f32 %v753_v53, %v737_v61  ;;  %v1956_v32 = vpop.f32.mrf.mxu0  ;;  %1966 = vmatprep.mubr.msk.f32.mxu0 %vm2138_vm1, %v2137_v5  ;;  %v61_v38 = vld [vmem:[%s2868_s1 + $0x88] sm:$0xff]  ;;  %v959_v47 = vpop.permute.xlu1 %958 }
 0x294   :  { %v739_v6 = vmax.f32 %v731_v57, %v735_v63  ;;  %v734_v8 = vmul.f32 0.01, %v730_v0  ;;  %v765_v18 = vmul.f32 %v748_v10, %v736_v3  ;;  %v795_v24 = vadd.f32 %v782_v59, %v766_v12  ;;  %v301_v33 = vpop.f32.mrf.mxu0 }
 0x295   :  { %1967 = vmatmul.mubr.msk.f32.gmra.mxu0 %vm73_vm2, %v61_v38 }
 0x296   :  { %v768_v14 = vmul.f32 %v763_v41, %v739_v6  ;;  %v738_v17 = vmax.f32 %v730_v0, %v734_v8  ;;  %v794_v27 = vadd.f32 %v777_v25, %v765_v18  ;;  %v2724_v28 = vadd.f32 %v795_v24, %v2664_v23  ;;  %v1732_v23 = vld [vmem:[%s2870_s3 + $0x50] sm:$0xff]  ;;  %v1959_v34 = vpop.f32.mrf.mxu0  ;;  %1969 = vmatprep.mubr.msk.f32.mxu0 %vm2138_vm1, %v2137_v5  ;;  %v63_v41 = vld [vmem:[%s2868_s1 + $0x98] sm:$0xff]  ;;  %v954_v61 = vpop.permute.xlu1 %953 }
 0x298   :  { %v767_v19 = vmul.f32 %v758_v42, %v738_v17  ;;  %v797_v22 = vadd.f32 %v792_v48, %v768_v14  ;;  %v306_v35 = vpop.f32.mrf.mxu0  ;;  %v927_v42 = vpop.permute.xlu0 %926 }
 0x299   :  { %1970 = vmatmul.mubr.msk.f32.gmra.mxu0 %vm73_vm2, %v62_v39 }
 0x29a   :  { %v2715_v60 = vadd.f32 %v797_v22, %v2655_v15  ;;  %v796_v62 = vadd.f32 %v787_v1, %v767_v19  ;;  %v2729_v15 = vadd.f32 %v794_v27, %v2669_v56  ;;  %v1733_v56 = vld [vmem:[%s2870_s3 + $0x58] sm:$0xff]  ;;  %v1962_v36 = vpop.f32.mrf.mxu0  ;;  %1972 = vmatprep.mubr.msk.f32.mxu0 %vm2138_vm1, %v2137_v5  ;;  %v949_v18 = vpop.permute.xlu1 %948 }
 0x29c   :  { %2030 = vmatprep.subr.mxu1 %v2715_v60  ;;  %v2719_v26 = vadd.f32 %v796_v62, %v2659_v21  ;;  %v1731_v21 = vld [vmem:[%s2870_s3 + $0x48] sm:$0xff]  ;;  %v917_v44 = vpop.permute.xlu0 %916 }
 0x29d   :  { %2031 = vmatpush3.msra.mxu1 %v2715_v60  ;;  %1973 = vmatmul.mubr.msk.f32.gmra.mxu0 %vm73_vm2, %v63_v41  ;;  %v1770_v41 = vld [vmem:[%s2870_s3 + $0x80] sm:$0xff] }
 0x29e   :  { %2032 = vmatprep.subr.mxu1 %v2719_v26  ;;  %1975 = vmatprep.mubr.msk.f32.mxu0 %vm2138_vm1, %v2137_v5 }
 0x29f   :  { %2033 = vmatpush3.msra.mxu1 %v2719_v26 }
 0x2a0   :  { %2034 = vmatprep.subr.mxu1 %v2724_v28  ;;  %v964_v46 = vpop.permute.xlu0 %963 }
 0x2a1   :  { %2035 = vmatpush3.msra.mxu1 %v2724_v28 }
 0x2a2   :  { %2036 = vmatprep.subr.mxu1 %v2729_v15 }
 0x2a3   :  { %2037 = vmatpush3.msra.mxu1 %v2729_v15 }
 0x2a4   :  { %2039 = vmatmul.mubr.msk.f32.vlgmr.msra.gmra.mxu1 %vm407_vm3, %v1731_v21  ;;  %v993_v53 = vpop.permute.xlu0 %992 }
 0x2a5   :  { %2041 = vmatprep.mubr.msk.f32.mxu1 %vm407_vm3, %v1732_v23 }
 0x2a8   :  { %2042 = vmatmul.mubr.msk.f32.gmra.mxu1 %vm407_vm3, %v1733_v56  ;;  %v988_v10 = vpop.permute.xlu0 %987 }
 0x2a9   :  { %2052 = vmatprep.mubr.msk.f32.mxu1 %vm407_vm3, %v1750_v40 }
 0x2ac   :  { %v983_v27 = vpop.permute.xlu0 %982 }
 0x364   :  { %v2040_v48 = vpop.f32.mrf.mxu1 }
 0x365   :  { %v891_v49 = vadd.f32 %v2040_v48, %v296_v31 }
 0x366   :  { %v885_v50 = vpop.f32.mrf.mxu1 }
 0x367   :  { %v930_v51 = vadd.f32 %v917_v44, %v891_v49  ;;  %v886_v52 = vadd.f32 %v885_v50, %v291_v29  ;;  %v978_v29 = vpop.permute.xlu1 %977 }
 0x368   :  { %v2043_v54 = vpop.f32.mrf.mxu1 }
 0x369   :  { %v934_v55 = vmul.f32 0.01, %v930_v51  ;;  %v929_v57 = vadd.f32 %v912_v45, %v886_v52  ;;  %v901_v58 = vadd.f32 %v2043_v54, %v306_v35 }
 0x36a   :  { %v895_v63 = vpop.f32.mrf.mxu1 }
 0x36b   :  { %v933_v0 = vmul.f32 0.01, %v929_v57  ;;  %v932_v5 = vadd.f32 %v927_v42, %v901_v58  ;;  %v896_v1 = vadd.f32 %v895_v63, %v301_v33  ;;  %v938_v3 = vmax.f32 %v930_v51, %v934_v55  ;;  %v311_v33 = vpop.f32.mrf.mxu0  ;;  %v64_v42 = vld [vmem:[%s2868_s1 + $0xa0] sm:$0xff]  ;;  %v1123_v44 = vpop.permute.xlu1 %1122 }
 0x36c   :  { %1976 = vmatmul.mubr.msk.f32.gmra.mxu0 %vm73_vm2, %v64_v42 }
 0x36d   :  { %v936_v6 = vmul.f32 0.01, %v932_v5  ;;  %v931_v8 = vadd.f32 %v922_v43, %v896_v1  ;;  %v937_v12 = vmax.f32 %v929_v57, %v933_v0  ;;  %v967_v19 = vmul.f32 %v954_v61, %v938_v3  ;;  %v1965_v34 = vpop.f32.mrf.mxu0  ;;  %v1128_v43 = vpop.permute.xlu0 %1127 }
 0x36f   :  { %v940_v14 = vmax.f32 %v932_v5, %v936_v6  ;;  %v935_v17 = vmul.f32 0.01, %v931_v8  ;;  %v966_v62 = vmul.f32 %v949_v18, %v937_v12  ;;  %v996_v56 = vadd.f32 %v983_v27, %v967_v19  ;;  %v316_v35 = vpop.f32.mrf.mxu0 }
 0x371   :  { %v969_v22 = vmul.f32 %v964_v46, %v940_v14  ;;  %v939_v59 = vmax.f32 %v931_v8, %v935_v17  ;;  %v995_v31 = vadd.f32 %v978_v29, %v966_v62  ;;  %v2784_v32 = vadd.f32 %v996_v56, %v2724_v28  ;;  %v1752_v28 = vld [vmem:[%s2870_s3 + $0x70] sm:$0xff]  ;;  %v1968_v36 = vpop.f32.mrf.mxu0  ;;  %v1118_v45 = vpop.permute.xlu0 %1117 }
 0x372   :  { %v1113_v46 = vpop.permute.xlu1 %1112  ;;  %v1790_v36 = vld [vmem:[%s2870_s3 + $0xa0] sm:$0xff] }
 0x373   :  { %v968_v24 = vmul.f32 %v959_v47, %v939_v59  ;;  %v998_v25 = vadd.f32 %v993_v53, %v969_v22  ;;  %v321_v37 = vpop.f32.mrf.mxu0 }
 0x375   :  { %v2775_v21 = vadd.f32 %v998_v25, %v2715_v60  ;;  %v997_v23 = vadd.f32 %v988_v10, %v968_v24  ;;  %v2789_v60 = vadd.f32 %v995_v31, %v2729_v15  ;;  %v1753_v15 = vld [vmem:[%s2870_s3 + $0x78] sm:$0xff]  ;;  %v1971_v38 = vpop.f32.mrf.mxu0  ;;  %v1165_v47 = vpop.permute.xlu0 %1164 }
 0x376   :  { %v1160_v48 = vpop.permute.xlu1 %1159 }
 0x377   :  { %2044 = vmatprep.subr.mxu1 %v2775_v21  ;;  %v2779_v30 = vadd.f32 %v997_v23, %v2719_v26  ;;  %v1751_v26 = vld [vmem:[%s2870_s3 + $0x68] sm:$0xff]  ;;  %v326_v39 = vpop.f32.mrf.mxu0 }
 0x378   :  { %2045 = vmatpush3.msra.mxu1 %v2775_v21 }
 0x379   :  { %2046 = vmatprep.subr.mxu1 %v2779_v30  ;;  %v1974_v40 = vpop.f32.mrf.mxu0  ;;  %v1194_v54 = vpop.permute.xlu0 %1193 }
 0x37a   :  { %2047 = vmatpush3.msra.mxu1 %v2779_v30  ;;  %v1155_v63 = vpop.permute.xlu1 %1154 }
 0x37b   :  { %2048 = vmatprep.subr.mxu1 %v2784_v32 }
 0x37c   :  { %2049 = vmatpush3.msra.mxu1 %v2784_v32 }
 0x37d   :  { %2050 = vmatprep.subr.mxu1 %v2789_v60  ;;  %v1189_v12 = vpop.permute.xlu0 %1188 }
 0x37e   :  { %2051 = vmatpush3.msra.mxu1 %v2789_v60  ;;  %v1150_v19 = vpop.permute.xlu1 %1149 }
 0x37f   :  { %2053 = vmatmul.mubr.msk.f32.vlgmr.msra.gmra.mxu1 %vm407_vm3, %v1751_v26 }
 0x380   :  { %2055 = vmatprep.mubr.msk.f32.mxu1 %vm407_vm3, %v1752_v28 }
 0x381   :  { %v1184_v23 = vpop.permute.xlu0 %1183 }
 0x382   :  { %v1179_v26 = vpop.permute.xlu1 %1178 }
 0x383   :  { %2056 = vmatmul.mubr.msk.f32.gmra.mxu1 %vm407_vm3, %v1753_v15 }
 0x384   :  { %2066 = vmatprep.mubr.msk.f32.mxu1 %vm407_vm3, %v1770_v41 }
 0x386   :  { %v1324_v38 = vpop.permute.xlu1 %1323 }
 0x38a   :  { %v1314_v40 = vpop.permute.xlu1 %1313 }
 0x38e   :  { %v1361_v42 = vpop.permute.xlu1 %1360 }
 0x43f   :  { %v2054_v49 = vpop.f32.mrf.mxu1 }
 0x440   :  { %v1092_v50 = vadd.f32 %v2054_v49, %v316_v35  ;;  %v1772_v35 = vld [vmem:[%s2870_s3 + $0x90] sm:$0xff] }
 0x441   :  { %v1086_v51 = vpop.f32.mrf.mxu1 }
 0x442   :  { %v1131_v52 = vadd.f32 %v1118_v45, %v1092_v50  ;;  %v1087_v53 = vadd.f32 %v1086_v51, %v311_v33 }
 0x443   :  { %v2057_v55 = vpop.f32.mrf.mxu1 }
 0x444   :  { %v1135_v57 = vmul.f32 0.01, %v1131_v52  ;;  %v1130_v58 = vadd.f32 %v1113_v46, %v1087_v53  ;;  %v1102_v61 = vadd.f32 %v2057_v55, %v326_v39  ;;  %v1356_v53 = vpop.permute.xlu1 %1355 }
 0x445   :  { %v1096_v0 = vpop.f32.mrf.mxu1 }
 0x446   :  { %v1134_v5 = vmul.f32 0.01, %v1130_v58  ;;  %v1133_v1 = vadd.f32 %v1128_v43, %v1102_v61  ;;  %v1097_v3 = vadd.f32 %v1096_v0, %v321_v37  ;;  %v1139_v6 = vmax.f32 %v1131_v52, %v1135_v57  ;;  %v1329_v37 = vpop.permute.xlu0 %1328 }
 0x448   :  { %v1137_v8 = vmul.f32 0.01, %v1133_v1  ;;  %v1132_v10 = vadd.f32 %v1123_v44, %v1097_v3  ;;  %v1138_v14 = vmax.f32 %v1130_v58, %v1134_v5  ;;  %v1168_v22 = vmul.f32 %v1155_v63, %v1139_v6  ;;  %v1351_v6 = vpop.permute.xlu1 %1350 }
 0x44a   :  { %v1141_v17 = vmax.f32 %v1133_v1, %v1137_v8  ;;  %v1136_v18 = vmul.f32 0.01, %v1132_v10  ;;  %v1167_v24 = vmul.f32 %v1150_v19, %v1138_v14  ;;  %v1197_v31 = vadd.f32 %v1184_v23, %v1168_v22  ;;  %v1319_v39 = vpop.permute.xlu0 %1318  ;;  %v1791_v23 = vld [vmem:[%s2870_s3 + $0xa8] sm:$0xff] }
 0x44c   :  { %v1170_v59 = vmul.f32 %v1165_v47, %v1141_v17  ;;  %v1140_v62 = vmax.f32 %v1132_v10, %v1136_v18  ;;  %v1196_v15 = vadd.f32 %v1179_v26, %v1167_v24  ;;  %v1201_v33 = vadd.f32 %v1197_v31, %v2784_v32  ;;  %v331_v32 = vpop.f32.mrf.mxu0 }
 0x44e   :  { %v1169_v25 = vmul.f32 %v1160_v48, %v1140_v62  ;;  %v1199_v27 = vadd.f32 %v1194_v54, %v1170_v59  ;;  %v1200_v34 = vadd.f32 %v1196_v15, %v2789_v60  ;;  %v1977_v60 = vpop.f32.mrf.mxu0  ;;  %v1366_v41 = vpop.permute.xlu0 %1365 }
 0x450   :  { %v1203_v56 = vadd.f32 %v1199_v27, %v2775_v21  ;;  %v1198_v29 = vadd.f32 %v1189_v12, %v1169_v25  ;;  %v1771_v21 = vld [vmem:[%s2870_s3 + $0x88] sm:$0xff] }
 0x452   :  { %2058 = vmatprep.subr.mxu1 %v1203_v56  ;;  %v1202_v28 = vadd.f32 %v1198_v29, %v2779_v30  ;;  %v1773_v30 = vld [vmem:[%s2870_s3 + $0x98] sm:$0xff]  ;;  %v1395_v48 = vpop.permute.xlu0 %1394 }
 0x453   :  { %2059 = vmatpush3.msra.mxu1 %v1203_v56  ;;  %v1793_v29 = vld [vmem:[%s2870_s3 + $0xb8] sm:$0xff] }
 0x454   :  { %2060 = vmatprep.subr.mxu1 %v1202_v28 }
 0x455   :  { %2061 = vmatpush3.msra.mxu1 %v1202_v28 }
 0x456   :  { %2062 = vmatprep.subr.mxu1 %v1201_v33  ;;  %v1390_v5 = vpop.permute.xlu0 %1389 }
 0x457   :  { %2063 = vmatpush3.msra.mxu1 %v1201_v33 }
 0x458   :  { %2064 = vmatprep.subr.mxu1 %v1200_v34 }
 0x459   :  { %2065 = vmatpush3.msra.mxu1 %v1200_v34 }
 0x45a   :  { %2067 = vmatmul.mubr.msk.f32.vlgmr.msra.gmra.mxu1 %vm407_vm3, %v1771_v21  ;;  %v1385_v18 = vpop.permute.xlu0 %1384 }
 0x45b   :  { %2069 = vmatprep.mubr.msk.f32.mxu1 %vm407_vm3, %v1772_v35 }
 0x45e   :  { %2070 = vmatmul.mubr.msk.f32.gmra.mxu1 %vm407_vm3, %v1773_v30  ;;  %v1515_v31 = vpop.permute.xlu0 %1514 }
 0x45f   :  { %2080 = vmatprep.mubr.msk.f32.mxu1 %vm407_vm3, %v1790_v36 }
 0x51a   :  { %v2068_v43 = vpop.f32.mrf.mxu1 }
 0x51b   :  { %v1293_v44 = vadd.f32 %v2068_v43, %v2610_v2 }
 0x51c   :  { %v1287_v45 = vpop.f32.mrf.mxu1 }
 0x51d   :  { %v1332_v46 = vadd.f32 %v1319_v39, %v1293_v44  ;;  %v1288_v47 = vadd.f32 %v1287_v45, %v331_v32 }
 0x51e   :  { %v2071_v49 = vpop.f32.mrf.mxu1 }
 0x51f   :  { %v1336_v50 = vmul.f32 0.01, %v1332_v46  ;;  %v1331_v51 = vadd.f32 %v1314_v40, %v1288_v47  ;;  %v1303_v52 = vadd.f32 %v2071_v49, %v2614_v7 }
 0x520   :  { %v1297_v54 = vpop.f32.mrf.mxu1 }
 0x521   :  { %v1335_v55 = vmul.f32 0.01, %v1331_v51  ;;  %v1334_v57 = vadd.f32 %v1329_v37, %v1303_v52  ;;  %v1298_v58 = vadd.f32 %v1297_v54, %v2612_v4  ;;  %v1340_v61 = vmax.f32 %v1332_v46, %v1336_v50  ;;  %v1380_v4 = vpop.permute.xlu1 %1379 }
 0x523   :  { %v1338_v63 = vmul.f32 0.01, %v1334_v57  ;;  %v1333_v0 = vadd.f32 %v1324_v38, %v1298_v58  ;;  %v1339_v2 = vmax.f32 %v1331_v51, %v1335_v55  ;;  %v1369_v8 = vmul.f32 %v1356_v53, %v1340_v61 }
 0x525   :  { %v1342_v1 = vmax.f32 %v1334_v57, %v1338_v63  ;;  %v1337_v3 = vmul.f32 0.01, %v1333_v0  ;;  %v1368_v14 = vmul.f32 %v1351_v6, %v1339_v2  ;;  %v1398_v59 = vadd.f32 %v1385_v18, %v1369_v8  ;;  %v1520_v26 = vpop.permute.xlu1 %1519 }
 0x527   :  { %v1371_v10 = vmul.f32 %v1366_v41, %v1342_v1  ;;  %v1341_v12 = vmax.f32 %v1333_v0, %v1337_v3  ;;  %v1397_v24 = vadd.f32 %v1380_v4, %v1368_v14  ;;  %v1402_v25 = vadd.f32 %v1398_v59, %v1201_v33 }
 0x529   :  { %v1370_v17 = vmul.f32 %v1361_v42, %v1341_v12  ;;  %v1400_v7 = vadd.f32 %v1395_v48, %v1371_v10  ;;  %v1401_v27 = vadd.f32 %v1397_v24, %v1200_v34  ;;  %v1530_v15 = vpop.permute.xlu1 %1529  ;;  %v1650_v24 = vlaneseq }
 0x52b   :  { %v2837_v19 = vadd.f32 %v1400_v7, %v1203_v56  ;;  %v1399_v22 = vadd.f32 %v1390_v5, %v1370_v17  ;;  %v1792_v56 = vld [vmem:[%s2870_s3 + $0xb0] sm:$0xff]  ;;  %s2139_s3 = smov [#allocation3]  }
 0x52c   :  { %s1668_s17 = sshll.u32 %s2139_s3, 4  ;;  %s1669_s17 = int_to_ptr.vmem [resolvable:$true] %s1668_s17 }
 0x52d   :  { %2072 = vmatprep.subr.mxu1 %v2837_v19  ;;  %v2840_v62 = vadd.f32 %v1399_v22, %v1202_v28  ;;  %v1525_v28 = vpop.permute.xlu0 %1524  ;;  %v1557_v34 = vpop.permute.xlu1 %1556  ;;  %s2114_s18 = scalar_lea.vmem %s1669_s17, 16  ;;  %s2118_s19 = scalar_lea.vmem %s1669_s17, 32 }
 0x52e   :  { %2073 = vmatpush3.msra.mxu1 %v2837_v19  ;;  %p2115_p0 = scmp.ne.s32.totalorder %s1669_s17, %s2114_s18  ;;  %p2119_p1 = scmp.lt.s32.totalorder %s1669_s17, %s1669_s17 }
 0x52f   :  { %2074 = vmatprep.subr.mxu1 %v2840_v62  ;;  %p2120_p2 = scmp.lt.s32.totalorder %s2118_s19, %s2114_s18 }
 0x530   :  { %2075 = vmatpush3.msra.mxu1 %v2840_v62 }
 0x531   :  { %2076 = vmatprep.subr.mxu1 %v1402_v25  ;;  %v1552_v33 = vpop.permute.xlu0 %1551  ;;  %v1581_v35 = vpop.permute.xlu1 %1580  ;;  %p2121_p3 = por %p2120_p2, %p2119_p1 }
 0x532   :  { %2077 = vmatpush3.msra.mxu1 %v1402_v25 }
 0x533   :  { %2078 = vmatprep.subr.mxu1 %v1401_v27  ;;  %p2122_p4 = pnand %p2121_p3, %p2115_p0 }
 0x534   :  { %2079 = vmatpush3.msra.mxu1 %v1401_v27 }
 0x535   :  { %2081 = vmatmul.mubr.msk.f32.vlgmr.msra.gmra.mxu1 %vm407_vm3, %v1791_v23  ;;  %v1562_v21 = vpop.permute.xlu0 %1561  ;;  %v1567_v39 = vpop.permute.xlu1 %1566  ;;  %v1651_v23 = vshrl.u32 %v1650_v24, 7 }
 0x536   :  { %2083 = vmatprep.mubr.msk.f32.mxu1 %vm407_vm3, %v1792_v56 }
 0x539   :  { %2084 = vmatmul.mubr.msk.f32.gmra.mxu1 %vm407_vm3, %v1793_v29  ;;  %v1586_v60 = vpop.permute.xlu0 %1585  ;;  %v1596_v53 = vpop.permute.xlu1 %1595 }
 0x53d   :  { %v1591_v49 = vpop.permute.xlu0 %1590  ;;  %v1618_v3 = vpop.permute.xlu1 %1617 }
 0x541   :  { %v1628_v18 = vpop.permute.xlu1 %1627 }
 0x5f5   :  { %v2082_v30 = vpop.f32.mrf.mxu1 }
 0x5f6   :  { %v1494_v32 = vadd.f32 %v2082_v30, %v2618_v11 }
 0x5f7   :  { %v1488_v36 = vpop.f32.mrf.mxu1 }
 0x5f8   :  { %v1533_v37 = vadd.f32 %v1520_v26, %v1494_v32  ;;  %v1489_v38 = vadd.f32 %v1488_v36, %v2616_v9 }
 0x5f9   :  { %v2085_v40 = vpop.f32.mrf.mxu1 }
 0x5fa   :  { %v1537_v41 = vmul.f32 0.01, %v1533_v37  ;;  %v1532_v42 = vadd.f32 %v1515_v31, %v1489_v38  ;;  %v1504_v43 = vadd.f32 %v2085_v40, %v2622_v16  ;;  %v1613_v16 = vpop.permute.xlu0 %1612  ;;  %v1652_v31 = vsub.s32 0, %v1651_v23 }
 0x5fb   :  { %v1498_v44 = vpop.f32.mrf.mxu1 }
 0x5fc   :  { %v1541_v45 = vmax.f32 %v1533_v37, %v1537_v41  ;;  %v1536_v46 = vmul.f32 0.01, %v1532_v42  ;;  %v1535_v47 = vadd.f32 %v1530_v15, %v1504_v43  ;;  %v1499_v48 = vadd.f32 %v1498_v44, %v2620_v13 }
 0x5fe   :  { %v1570_v50 = vmul.f32 %v1557_v34, %v1541_v45  ;;  %v1540_v11 = vmax.f32 %v1532_v42, %v1536_v46  ;;  %v1539_v51 = vmul.f32 0.01, %v1535_v47  ;;  %v1534_v52 = vadd.f32 %v1525_v28, %v1499_v48  ;;  %v1623_v14 = vpop.permute.xlu0 %1622 }
 0x600   :  { %v1599_v54 = vadd.f32 %v1586_v60, %v1570_v50  ;;  %v1569_v9 = vmul.f32 %v1552_v33, %v1540_v11  ;;  %v1543_v55 = vmax.f32 %v1535_v47, %v1539_v51  ;;  %v1538_v57 = vmul.f32 0.01, %v1534_v52 }
 0x602   :  { %v1598_v58 = vadd.f32 %v1581_v35, %v1569_v9  ;;  %v1572_v61 = vmul.f32 %v1567_v39, %v1543_v55  ;;  %v1542_v63 = vmax.f32 %v1534_v52, %v1538_v57  ;;  %v1603_v0 = vadd.f32 %v1599_v54, %v1402_v25  ;;  %v1648_v28 = vpop.permute.xlu0 %1647 }
 0x604   :  { %v1602_v5 = vadd.f32 %v1598_v58, %v1401_v27  ;;  %v1601_v2 = vadd.f32 %v1596_v53, %v1572_v61  ;;  %v1571_v1 = vmul.f32 %v1562_v21, %v1542_v63  ;;  %v1631_v8 = vmul.f32 %v1618_v3, %v1603_v0 }
 0x606   :  { %v1630_v13 = vmul.f32 %v1613_v16, %v1602_v5  ;;  %v1600_v6 = vadd.f32 %v1591_v49, %v1571_v1  ;;  %v1605_v10 = vadd.f32 %v1601_v2, %v2837_v19  ;;  %v1653_v19 = vrot.slane %v1648_v28, %v1652_v31 }
 0x608   :  { %v1604_v12 = vadd.f32 %v1600_v6, %v2840_v62  ;;  %v1634_v17 = vadd.f32 %v1631_v8, %v1630_v13  ;;  %v1633_v22 = vmul.f32 %v1628_v18, %v1605_v10 }
 0x60a   :  { %v1632_v7 = vmul.f32 %v1623_v14, %v1604_v12 }
 0x60c   :  { %v1635_v59 = vadd.f32 %v1634_v17, %v1632_v7 }
 0x60e   :  { %v1636_v4 = vadd.f32 %v1635_v59, %v1633_v22 }
 0x610   :  { %v1637_v25 = vrot.slane %v1636_v4, 4 }
 0x612   :  { %v1638_v27 = vadd.f32 %v1637_v25, %v1636_v4 }
 0x614   :  { %v1639_v56 = vrot.slane %v1638_v27, 2 }
 0x616   :  { %v1640_v29 = vadd.f32 %v1639_v56, %v1638_v27 }
 0x618   :  { %v1641_v26 = vrot.slane %v1640_v29, 1 }
 0x61a   :  { %v1642_v15 = vadd.f32 %v1641_v26, %v1640_v29 }
 0x61c   :  { %v1643_v62 = vadd.f32 %v1642_v15, %v2624_v20 }
 0x61e   :  { %v1654_v33 = vadd.f32 %v1653_v19, %v1643_v62 }
 0x620   :  { %v1810_v34 = vmul.f32 -1.442695, %v1654_v33 }
 0x622   :  { %2110 = vpow2.f32 %v1810_v34 }
 0x62f   :  { %v2111_v21 = vpop.eup %2110 }
 0x630   :  { %v1658_v35 = vadd.f32 1.0, %v2111_v21 }
 0x632   :  { %2112 = vrcp.f32 %v1658_v35 }
 0x63f   :  { %v2113_v30 = vpop.eup %2112 }
 0x640   :  { %1661 = vst [vmem:[#allocation3] sm:$0x1] %v2113_v30 }
 0x641   :  { %2125 = shalt.err (!%p2122_p4)
}
 0x642   :  { %1671 = dma.vmem_to_hbm [thread:$0]  %s1669_s17, 16, %s2876_s9, [#allocation4]  }
 0x643   :  { %2134 = dma.done.wait [#allocation4], 16  }
 0x644   :  { %2135 = vsyncadd [#allocation4], 4294967280 }
 0x645   :  { %1675 = vsyncpa [#allocation4], 1 }

</bundles_post_ra>
